<compile_context>
chip_gen: v7x
topology: tpu7x:2x2x1
jax: 0.10.0
libtpu: 0.0.40
codegen_flags: <defaults>
</compile_context>

<pallas_src>
import jax
import jax.numpy as jnp
import numpy as np
from jax import lax
from jax.experimental import pallas as pl
from jax.experimental.pallas import tpu as pltpu


def _fused_head_kernel(xpad_ref, w_ref, b_ref, o_ref):
    """One (batch, row-tile) grid step; both conv heads fused.

    xpad_ref : (1, H+2, W+2, C)  bf16 zero-padded NHWC image (resident / batch)
    w_ref    : (9*C, Np)  bf16   im2col weights, row index = (dy*3+dx)*C + ci,
                                 columns = [cls Cout | reg Cout | zero pad]
    b_ref    : (1, Np)    f32    folded BN bias (zero in padded columns)
    o_ref    : (1, TH*W, Np) f32 lane-dense output row tile
    """
    C = xpad_ref.shape[3]
    W = xpad_ref.shape[2] - 2
    Np = o_ref.shape[2]
    TH = o_ref.shape[1] // W

    h = pl.program_id(1)
    r0 = pl.multiple_of(h * TH, 8)          # first output row of this tile

    # 9-tap accumulate: one K=C MXU matmul per conv tap with f32 accumulation.
    # (No materialized (TH*W, 9*C) im2col temp, no lane-axis concatenate.)
    acc = jnp.zeros((TH * W, Np), jnp.float32)
    for dy in range(3):
        for dx in range(3):
            tap = xpad_ref[0, pl.ds(r0 + dy, TH), pl.ds(dx, W), :]   # (TH,W,C)
            tap = tap.reshape(TH * W, C)                             # bf16
            w_tap = w_ref[pl.ds((dy * 3 + dx) * C, C), :]            # (C, Np)
            acc = acc + jnp.dot(tap, w_tap,
                                preferred_element_type=jnp.float32)

    acc = jnp.maximum(acc + b_ref[...], 0.0)       # fused BN bias + ReLU (f32)
    o_ref[...] = acc[None, :, :].astype(o_ref.dtype)


def _pick_row_tile(H, W, target_m=256, max_m=2048):
    """Smallest multiple-of-8 divisor of H giving >= target_m matmul rows."""
    choices = [th for th in range(8, H + 1, 8)
               if H % th == 0 and th * W <= max_m]
    if not choices:
        return H
    for th in choices:
        if th * W >= target_m:
            return th
    return choices[-1]


def fused_heads_pallas(x_nhwc, w_fused, b_fused, row_tile=None):
    """x_nhwc: (N,H,W,C) f32; w_fused: (9*C, Np) bf16; b_fused: (1, Np) f32."""
    N, H, W, C = x_nhwc.shape
    K9C, Np = w_fused.shape

    th = row_tile if row_tile is not None else _pick_row_tile(H, W)
    if H % th != 0:
        th = H
    n_row_tiles = H // th

    # bf16 input (halves input HBM traffic; MXU-native) padded once, shared by
    # both heads.  XLA fuses the convert into the pad.
    # TODO(synk): the 1-pixel halo pad could move into the kernel with edge
    # masking to save one full HBM read+write of the activation.
    xpad = jnp.pad(x_nhwc.astype(jnp.bfloat16),
                   ((0, 0), (1, 1), (1, 1), (0, 0)))

    out = pl.pallas_call(
        _fused_head_kernel,
        out_shape=jax.ShapeDtypeStruct((N, H * W, Np), jnp.float32),
        grid_spec=pltpu.PrefetchScalarGridSpec(
            num_scalar_prefetch=0,
            grid=(N, n_row_tiles),
            in_specs=[
                # Whole padded image resident per batch: block index ignores
                # the spatial axis, so it is fetched once per n; row tiles are
                # sliced in-kernel with pl.ds.
                pl.BlockSpec((1, H + 2, W + 2, C), lambda n, h: (n, 0, 0, 0)),
                # Constant weight/bias: single-buffered (no dead VMEM copy).
                pl.BlockSpec((K9C, Np), lambda n, h: (0, 0),
                             pipeline_mode=pl.Buffered(1)),
                pl.BlockSpec((1, Np), lambda n, h: (0, 0),
                             pipeline_mode=pl.Buffered(1)),
            ],
            out_specs=pl.BlockSpec((1, th * W, Np), lambda n, h: (n, h, 0)),
        ),
        compiler_params=pltpu.CompilerParams(
            dimension_semantics=("parallel", "parallel")),
    )(xpad, w_fused, b_fused)
    return out  # (N, H*W, Np)


def fold_bn(w_oihw, gamma, beta, mean, var, eps=1e-5):
    """Fold eval-mode BatchNorm into conv weight (OIHW); return im2col layout."""
    scale = gamma / jnp.sqrt(var + eps)                    # (Cout,)
    w_folded = w_oihw * scale[:, None, None, None]         # scale out channels
    b_folded = beta - mean * scale                         # (Cout,)
    cin = w_oihw.shape[1]
    # OIHW -> (kh, kw, cin, cout) -> (9*cin, cout); row = (dy*3+dx)*cin + ci
    w2d = jnp.transpose(w_folded, (2, 3, 1, 0)).reshape(9 * cin, -1)
    return w2d, b_folded


def fuse_heads(cls_w2d, cls_b, reg_w2d, reg_b, lane=128):
    """Concat cls/reg weights along Cout, zero-pad to a 128 multiple, bf16."""
    _, cout = cls_w2d.shape
    w = jnp.concatenate([cls_w2d, reg_w2d], axis=1)        # (9C, 2C)
    b = jnp.concatenate([cls_b, reg_b], axis=0)            # (2C,)
    n_pad = (-2 * cout) % lane
    if n_pad:
        w = jnp.pad(w, ((0, 0), (0, n_pad)))
        b = jnp.pad(b, ((0, n_pad),))
    return w.astype(jnp.bfloat16), b[None, :].astype(jnp.float32)


def naive_head_forward(x_nchw, w_fused, b_fused, head_dim, row_tile=None):
    """NaiveHead.forward: returns (cls_feats, reg_feats) in NCHW."""
    N, C, H, W = x_nchw.shape
    x_nhwc = jnp.transpose(x_nchw, (0, 2, 3, 1))
    out = fused_heads_pallas(x_nhwc, w_fused, b_fused, row_tile=row_tile)
    out = out.reshape(N, H, W, -1)
    cls = jnp.transpose(out[..., :head_dim], (0, 3, 1, 2))
    reg = jnp.transpose(out[..., head_dim:2 * head_dim], (0, 3, 1, 2))
    return cls, reg


def _reference_conv_bn_relu(x_nchw, w_oihw, gamma, beta, mean, var, eps=1e-5):
    y = lax.conv_general_dilated(
        x_nchw, w_oihw, window_strides=(1, 1), padding=((1, 1), (1, 1)),
        dimension_numbers=("NCHW", "OIHW", "NCHW"))
    scale = gamma / jnp.sqrt(var + eps)
    y = y * scale[None, :, None, None] + (beta - mean * scale)[None, :, None, None]
    return jnp.maximum(y, 0.0)


if __name__ == "__main__":
    # Small but module-consistent shapes: head_dim=32, batch=2, 16x16 features.
    N, C, H, W = 2, 32, 16, 16

    key = jax.random.PRNGKey(0)
    kx, kc, kr = jax.random.split(key, 3)

    x = jax.random.normal(kx, (N, C, H, W), dtype=jnp.float32)

    # Conv weights (OIHW), bias=False since a norm layer follows.
    cls_w = jax.random.normal(kc, (C, C, 3, 3), dtype=jnp.float32) * 0.01
    reg_w = jax.random.normal(kr, (C, C, 3, 3), dtype=jnp.float32) * 0.01

    # BatchNorm (eval mode, default init): gamma=1, beta=0, mean=0, var=1.
    gamma = jnp.ones((C,), jnp.float32)
    beta = jnp.zeros((C,), jnp.float32)
    mean = jnp.zeros((C,), jnp.float32)
    var = jnp.ones((C,), jnp.float32)

    cls_w2d, cls_b = fold_bn(cls_w, gamma, beta, mean, var)
    reg_w2d, reg_b = fold_bn(reg_w, gamma, beta, mean, var)
    w_fused, b_fused = fuse_heads(cls_w2d, cls_b, reg_w2d, reg_b)

    # row_tile=8 -> 2 spatial tiles per image, exercising the (N, H//th) grid.
    cls_out, reg_out = naive_head_forward(x, w_fused, b_fused,
                                          head_dim=C, row_tile=8)
    jax.block_until_ready((cls_out, reg_out))

    # Verify against a plain-JAX f32 reference (tolerances loosened for the
    # bf16 matmul operands; accumulation is still f32).
    cls_ref = _reference_conv_bn_relu(x, cls_w, gamma, beta, mean, var)
    reg_ref = _reference_conv_bn_relu(x, reg_w, gamma, beta, mean, var)
    assert cls_out.shape == (N, C, H, W) and reg_out.shape == (N, C, H, W)
    np.testing.assert_allclose(np.asarray(cls_out), np.asarray(cls_ref),
                               rtol=5e-2, atol=5e-3)
    np.testing.assert_allclose(np.asarray(reg_out), np.asarray(reg_ref),
                               rtol=5e-2, atol=5e-3)

    print("KERNEL_OK")
</pallas_src>

<mosaic_0001>
module attributes {stable_mosaic.version = 11 : i64} {
  func.func @_fused_head_kernel(%arg0: i32, %arg1: i32, %arg2: memref<1x18x18x32xbf16, #tpu.memory_space<vmem>>, %arg3: memref<288x128xbf16, #tpu.memory_space<vmem>>, %arg4: memref<1x128xf32, #tpu.memory_space<vmem>>, %arg5: memref<1x128x128xf32, #tpu.memory_space<vmem>>) attributes {dimension_semantics = [#tpu.dimension_semantics<parallel>, #tpu.dimension_semantics<parallel>], iteration_bounds = array<i64: 2, 2>, scalar_prefetch = 0 : i64, scratch_operands = 0 : i64, tpu.core_type = #tpu.core_type<tc>, window_params = [{transform_indices = @transform_0, window_bounds = array<i64: 1, 18, 18, 32>}, {pipeline_mode = #tpu.pipeline_mode<synchronous>, transform_indices = @transform_1, window_bounds = array<i64: 288, 128>}, {pipeline_mode = #tpu.pipeline_mode<synchronous>, transform_indices = @transform_2, window_bounds = array<i64: 1, 128>}, {transform_indices = @transform_3, window_bounds = array<i64: 1, 128, 128>}]} {
    %c8_i32 = arith.constant 8 : i32
    %0 = arith.muli %arg1, %c8_i32 : i32
    %1 = tpu.assume_multiple %0, 8 : i32
    %cst = arith.constant 0.000000e+00 : f32
    %2 = vector.broadcast %cst : f32 to vector<128x128xf32>
    %c0_i32 = arith.constant 0 : i32
    %3 = arith.addi %1, %c0_i32 : i32
    %c0 = arith.constant 0 : index
    %4 = arith.index_cast %3 : i32 to index
    %c0_0 = arith.constant 0 : index
    %c0_1 = arith.constant 0 : index
    %5 = vector.load %arg2[%c0, %4, %c0_0, %c0_1] : memref<1x18x18x32xbf16, #tpu.memory_space<vmem>>, vector<1x8x16x32xbf16>
    %6 = vector.shape_cast %5 : vector<1x8x16x32xbf16> to vector<8x16x32xbf16>
    %7 = vector.shape_cast %6 : vector<8x16x32xbf16> to vector<128x32xbf16>
    %c0_2 = arith.constant 0 : index
    %c0_3 = arith.constant 0 : index
    %8 = vector.load %arg3[%c0_2, %c0_3] : memref<288x128xbf16, #tpu.memory_space<vmem>>, vector<32x128xbf16>
    %cst_4 = arith.constant dense<0.000000e+00> : vector<128x128xf32>
    %9 = tpu.matmul %7, %8, %cst_4 {dimension_numbers = #tpu.dot_dimension_numbers<[1], [0], [0], [1], [0, 0, 1, 1], [], []>} : vector<128x32xbf16>, vector<32x128xbf16>, vector<128x128xf32> -> vector<128x128xf32>
    %10 = arith.addf %2, %9 : vector<128x128xf32>
    %c0_i32_5 = arith.constant 0 : i32
    %11 = arith.addi %1, %c0_i32_5 : i32
    %c0_6 = arith.constant 0 : index
    %12 = arith.index_cast %11 : i32 to index
    %c1 = arith.constant 1 : index
    %c0_7 = arith.constant 0 : index
    %13 = vector.load %arg2[%c0_6, %12, %c1, %c0_7] : memref<1x18x18x32xbf16, #tpu.memory_space<vmem>>, vector<1x8x16x32xbf16>
    %14 = vector.shape_cast %13 : vector<1x8x16x32xbf16> to vector<8x16x32xbf16>
    %15 = vector.shape_cast %14 : vector<8x16x32xbf16> to vector<128x32xbf16>
    %c32 = arith.constant 32 : index
    %c0_8 = arith.constant 0 : index
    %16 = vector.load %arg3[%c32, %c0_8] : memref<288x128xbf16, #tpu.memory_space<vmem>>, vector<32x128xbf16>
    %cst_9 = arith.constant dense<0.000000e+00> : vector<128x128xf32>
    %17 = tpu.matmul %15, %16, %cst_9 {dimension_numbers = #tpu.dot_dimension_numbers<[1], [0], [0], [1], [0, 0, 1, 1], [], []>} : vector<128x32xbf16>, vector<32x128xbf16>, vector<128x128xf32> -> vector<128x128xf32>
    %18 = arith.addf %10, %17 : vector<128x128xf32>
    %c0_i32_10 = arith.constant 0 : i32
    %19 = arith.addi %1, %c0_i32_10 : i32
    %c0_11 = arith.constant 0 : index
    %20 = arith.index_cast %19 : i32 to index
    %c2 = arith.constant 2 : index
    %c0_12 = arith.constant 0 : index
    %21 = vector.load %arg2[%c0_11, %20, %c2, %c0_12] : memref<1x18x18x32xbf16, #tpu.memory_space<vmem>>, vector<1x8x16x32xbf16>
    %22 = vector.shape_cast %21 : vector<1x8x16x32xbf16> to vector<8x16x32xbf16>
    %23 = vector.shape_cast %22 : vector<8x16x32xbf16> to vector<128x32xbf16>
    %c64 = arith.constant 64 : index
    %c0_13 = arith.constant 0 : index
    %24 = vector.load %arg3[%c64, %c0_13] : memref<288x128xbf16, #tpu.memory_space<vmem>>, vector<32x128xbf16>
    %cst_14 = arith.constant dense<0.000000e+00> : vector<128x128xf32>
    %25 = tpu.matmul %23, %24, %cst_14 {dimension_numbers = #tpu.dot_dimension_numbers<[1], [0], [0], [1], [0, 0, 1, 1], [], []>} : vector<128x32xbf16>, vector<32x128xbf16>, vector<128x128xf32> -> vector<128x128xf32>
    %26 = arith.addf %18, %25 : vector<128x128xf32>
    %c1_i32 = arith.constant 1 : i32
    %27 = arith.addi %1, %c1_i32 : i32
    %c0_15 = arith.constant 0 : index
    %28 = arith.index_cast %27 : i32 to index
    %c0_16 = arith.constant 0 : index
    %c0_17 = arith.constant 0 : index
    %29 = vector.load %arg2[%c0_15, %28, %c0_16, %c0_17] : memref<1x18x18x32xbf16, #tpu.memory_space<vmem>>, vector<1x8x16x32xbf16>
    %30 = vector.shape_cast %29 : vector<1x8x16x32xbf16> to vector<8x16x32xbf16>
    %31 = vector.shape_cast %30 : vector<8x16x32xbf16> to vector<128x32xbf16>
    %c96 = arith.constant 96 : index
    %c0_18 = arith.constant 0 : index
    %32 = vector.load %arg3[%c96, %c0_18] : memref<288x128xbf16, #tpu.memory_space<vmem>>, vector<32x128xbf16>
    %cst_19 = arith.constant dense<0.000000e+00> : vector<128x128xf32>
    %33 = tpu.matmul %31, %32, %cst_19 {dimension_numbers = #tpu.dot_dimension_numbers<[1], [0], [0], [1], [0, 0, 1, 1], [], []>} : vector<128x32xbf16>, vector<32x128xbf16>, vector<128x128xf32> -> vector<128x128xf32>
    %34 = arith.addf %26, %33 : vector<128x128xf32>
    %c1_i32_20 = arith.constant 1 : i32
    %35 = arith.addi %1, %c1_i32_20 : i32
    %c0_21 = arith.constant 0 : index
    %36 = arith.index_cast %35 : i32 to index
    %c1_22 = arith.constant 1 : index
    %c0_23 = arith.constant 0 : index
    %37 = vector.load %arg2[%c0_21, %36, %c1_22, %c0_23] : memref<1x18x18x32xbf16, #tpu.memory_space<vmem>>, vector<1x8x16x32xbf16>
    %38 = vector.shape_cast %37 : vector<1x8x16x32xbf16> to vector<8x16x32xbf16>
    %39 = vector.shape_cast %38 : vector<8x16x32xbf16> to vector<128x32xbf16>
    %c128 = arith.constant 128 : index
    %c0_24 = arith.constant 0 : index
    %40 = vector.load %arg3[%c128, %c0_24] : memref<288x128xbf16, #tpu.memory_space<vmem>>, vector<32x128xbf16>
    %cst_25 = arith.constant dense<0.000000e+00> : vector<128x128xf32>
    %41 = tpu.matmul %39, %40, %cst_25 {dimension_numbers = #tpu.dot_dimension_numbers<[1], [0], [0], [1], [0, 0, 1, 1], [], []>} : vector<128x32xbf16>, vector<32x128xbf16>, vector<128x128xf32> -> vector<128x128xf32>
    %42 = arith.addf %34, %41 : vector<128x128xf32>
    %c1_i32_26 = arith.constant 1 : i32
    %43 = arith.addi %1, %c1_i32_26 : i32
    %c0_27 = arith.constant 0 : index
    %44 = arith.index_cast %43 : i32 to index
    %c2_28 = arith.constant 2 : index
    %c0_29 = arith.constant 0 : index
    %45 = vector.load %arg2[%c0_27, %44, %c2_28, %c0_29] : memref<1x18x18x32xbf16, #tpu.memory_space<vmem>>, vector<1x8x16x32xbf16>
    %46 = vector.shape_cast %45 : vector<1x8x16x32xbf16> to vector<8x16x32xbf16>
    %47 = vector.shape_cast %46 : vector<8x16x32xbf16> to vector<128x32xbf16>
    %c160 = arith.constant 160 : index
    %c0_30 = arith.constant 0 : index
    %48 = vector.load %arg3[%c160, %c0_30] : memref<288x128xbf16, #tpu.memory_space<vmem>>, vector<32x128xbf16>
    %cst_31 = arith.constant dense<0.000000e+00> : vector<128x128xf32>
    %49 = tpu.matmul %47, %48, %cst_31 {dimension_numbers = #tpu.dot_dimension_numbers<[1], [0], [0], [1], [0, 0, 1, 1], [], []>} : vector<128x32xbf16>, vector<32x128xbf16>, vector<128x128xf32> -> vector<128x128xf32>
    %50 = arith.addf %42, %49 : vector<128x128xf32>
    %c2_i32 = arith.constant 2 : i32
    %51 = arith.addi %1, %c2_i32 : i32
    %c0_32 = arith.constant 0 : index
    %52 = arith.index_cast %51 : i32 to index
    %c0_33 = arith.constant 0 : index
    %c0_34 = arith.constant 0 : index
    %53 = vector.load %arg2[%c0_32, %52, %c0_33, %c0_34] : memref<1x18x18x32xbf16, #tpu.memory_space<vmem>>, vector<1x8x16x32xbf16>
    %54 = vector.shape_cast %53 : vector<1x8x16x32xbf16> to vector<8x16x32xbf16>
    %55 = vector.shape_cast %54 : vector<8x16x32xbf16> to vector<128x32xbf16>
    %c192 = arith.constant 192 : index
    %c0_35 = arith.constant 0 : index
    %56 = vector.load %arg3[%c192, %c0_35] : memref<288x128xbf16, #tpu.memory_space<vmem>>, vector<32x128xbf16>
    %cst_36 = arith.constant dense<0.000000e+00> : vector<128x128xf32>
    %57 = tpu.matmul %55, %56, %cst_36 {dimension_numbers = #tpu.dot_dimension_numbers<[1], [0], [0], [1], [0, 0, 1, 1], [], []>} : vector<128x32xbf16>, vector<32x128xbf16>, vector<128x128xf32> -> vector<128x128xf32>
    %58 = arith.addf %50, %57 : vector<128x128xf32>
    %c2_i32_37 = arith.constant 2 : i32
    %59 = arith.addi %1, %c2_i32_37 : i32
    %c0_38 = arith.constant 0 : index
    %60 = arith.index_cast %59 : i32 to index
    %c1_39 = arith.constant 1 : index
    %c0_40 = arith.constant 0 : index
    %61 = vector.load %arg2[%c0_38, %60, %c1_39, %c0_40] : memref<1x18x18x32xbf16, #tpu.memory_space<vmem>>, vector<1x8x16x32xbf16>
    %62 = vector.shape_cast %61 : vector<1x8x16x32xbf16> to vector<8x16x32xbf16>
    %63 = vector.shape_cast %62 : vector<8x16x32xbf16> to vector<128x32xbf16>
    %c224 = arith.constant 224 : index
    %c0_41 = arith.constant 0 : index
    %64 = vector.load %arg3[%c224, %c0_41] : memref<288x128xbf16, #tpu.memory_space<vmem>>, vector<32x128xbf16>
    %cst_42 = arith.constant dense<0.000000e+00> : vector<128x128xf32>
    %65 = tpu.matmul %63, %64, %cst_42 {dimension_numbers = #tpu.dot_dimension_numbers<[1], [0], [0], [1], [0, 0, 1, 1], [], []>} : vector<128x32xbf16>, vector<32x128xbf16>, vector<128x128xf32> -> vector<128x128xf32>
    %66 = arith.addf %58, %65 : vector<128x128xf32>
    %c2_i32_43 = arith.constant 2 : i32
    %67 = arith.addi %1, %c2_i32_43 : i32
    %c0_44 = arith.constant 0 : index
    %68 = arith.index_cast %67 : i32 to index
    %c2_45 = arith.constant 2 : index
    %c0_46 = arith.constant 0 : index
    %69 = vector.load %arg2[%c0_44, %68, %c2_45, %c0_46] : memref<1x18x18x32xbf16, #tpu.memory_space<vmem>>, vector<1x8x16x32xbf16>
    %70 = vector.shape_cast %69 : vector<1x8x16x32xbf16> to vector<8x16x32xbf16>
    %71 = vector.shape_cast %70 : vector<8x16x32xbf16> to vector<128x32xbf16>
    %c256 = arith.constant 256 : index
    %c0_47 = arith.constant 0 : index
    %72 = vector.load %arg3[%c256, %c0_47] : memref<288x128xbf16, #tpu.memory_space<vmem>>, vector<32x128xbf16>
    %cst_48 = arith.constant dense<0.000000e+00> : vector<128x128xf32>
    %73 = tpu.matmul %71, %72, %cst_48 {dimension_numbers = #tpu.dot_dimension_numbers<[1], [0], [0], [1], [0, 0, 1, 1], [], []>} : vector<128x32xbf16>, vector<32x128xbf16>, vector<128x128xf32> -> vector<128x128xf32>
    %74 = arith.addf %66, %73 : vector<128x128xf32>
    %c0_49 = arith.constant 0 : index
    %c0_50 = arith.constant 0 : index
    %75 = vector.load %arg4[%c0_49, %c0_50] : memref<1x128xf32, #tpu.memory_space<vmem>>, vector<1x128xf32>
    %76 = vector.broadcast %75 : vector<1x128xf32> to vector<128x128xf32>
    %77 = arith.addf %74, %76 : vector<128x128xf32>
    %cst_51 = arith.constant 0.000000e+00 : f32
    %78 = vector.broadcast %cst_51 : f32 to vector<128x128xf32>
    %79 = arith.maximumf %77, %78 : vector<128x128xf32>
    %80 = vector.shape_cast %79 : vector<128x128xf32> to vector<1x128x128xf32>
    %c0_52 = arith.constant 0 : index
    %c0_53 = arith.constant 0 : index
    %c0_54 = arith.constant 0 : index
    %81 = vector.load %arg5[%c0_52, %c0_53, %c0_54] : memref<1x128x128xf32, #tpu.memory_space<vmem>>, vector<1x128x128xf32>
    tpu.vector_store %arg5[%c0_52, %c0_53, %c0_54], %80 {strides = array<i32>} : memref<1x128x128xf32, #tpu.memory_space<vmem>>, vector<1x128x128xf32>,
    return
  }
  func.func @transform_0(%arg0: i32, %arg1: i32) -> (i32, i32, i32, i32) {
    %c0_i32 = arith.constant 0 : i32
    %c0_i32_0 = arith.constant 0 : i32
    %c0_i32_1 = arith.constant 0 : i32
    %c0_i32_2 = arith.constant 0 : i32
    return %arg0, %c0_i32, %c0_i32_0, %c0_i32_1 : i32, i32, i32, i32
  }
  func.func @transform_1(%arg0: i32, %arg1: i32) -> (i32, i32) {
    %c0_i32 = arith.constant 0 : i32
    %c0_i32_0 = arith.constant 0 : i32
    %c0_i32_1 = arith.constant 0 : i32
    return %c0_i32, %c0_i32_0 : i32, i32
  }
  func.func @transform_2(%arg0: i32, %arg1: i32) -> (i32, i32) {
    %c0_i32 = arith.constant 0 : i32
    %c0_i32_0 = arith.constant 0 : i32
    %c0_i32_1 = arith.constant 0 : i32
    return %c0_i32, %c0_i32_0 : i32, i32
  }
  func.func @transform_3(%arg0: i32, %arg1: i32) -> (i32, i32, i32) {
    %c0_i32 = arith.constant 0 : i32
    %c0_i32_0 = arith.constant 0 : i32
    return %arg0, %arg1, %c0_i32 : i32, i32, i32
  }
}

</mosaic_0001>

<bundles_post_ra>
// kernel: tpu_custom_call.1
= control target key start
LH: loop header
LB: loop body
LE: loop exit
PB: predicated region body
PF: predicated region fallthrough
CT: control target
= control target key end

     0   :  { %8 = vsyncpa [#allocation3], 0  ;;  %s4902_s0 = inlined_call_operand.vmem [shape: bf16[2,18,18,32], index: 0, kind: input, shape index: {}]   ;;  %s4903_s1 = inlined_call_operand.vmem [shape: bf16[288,128], index: 1, kind: input, shape index: {}]   ;;  %s4904_s2 = inlined_call_operand.vmem [shape: f32[1,128], index: 2, kind: input, shape index: {}]   ;;  %s4905_s3 = inlined_call_operand.hbm [shape: f32[2,256,128], index: 3, kind: output, shape index: {}]  }
   0x1   :  { %10 = vsyncpa [#allocation3 + $0x1], 0  ;;  %s3849_s12 = smov 0   ;;  %s3851_s13 = smov 0  }
   0x2   :  { %s3853_s14 = smov 0   ;;  %s3855_s15 = smov 0  }
   0x3   :  { %s3857_s16 = smov 0   ;;  %s3859_s17 = smov 0  }
   0x4   :  { %s3861_s18 = smov 0   ;;  %s3863_s19 = smov 0  }
   0x5 LB: > { %s2906_s20 = sadd.s32 4294967295, %s3824_s19   ;;  %s2907_s21 = sadd.s32 4294967294, %s3824_s19   ;;  %s3824_s19 = sphi %s3863_s19, %s16_s19   ;;  %s3820_s18 = sphi %s3861_s18, %s4935_s18   ;;  %s3816_s17 = sphi %s3859_s17, %s4934_s17   ;;  %s3812_s16 = sphi %s3857_s16, %s4933_s16   ;;  %s3808_s15 = sphi %s3855_s15, %s4932_s15   ;;  %s3804_s14 = sphi %s3853_s14, %s4931_s14   ;;  %s3800_s13 = sphi %s3851_s13, %s4930_s13   ;;  %s3796_s12 = sphi %s3849_s12, %s4929_s12  }
   0x6   : > { %s25_s22 = sadd.s32 1, %s3816_s17  ;;  %s28_s23 = sadd.s32 1, %s3820_s18 }
   0x7   : > { %p26_p0 = scmp.ge.s32.totalorder %s25_s22, 2  ;;  %p115_p1 = scmp.ne.s32.totalorder %s3804_s14, %s3800_s13 }
   0x8   : > { %p116_p2 = scmp.eq.s32.totalorder %s2906_s20, 3  ;;  %p121_p5 = scmp.ne.s32.totalorder %s3800_s13, %s3796_s12 }
   0x9   : > { %s4937_s22 = smov (%p26_p0, %s25_s22), 0  ;;  %s4939_s23 = smov (!%p26_p0, %s28_s23), %s3820_s18 }
   0xa   : > { %s101_s24 = ssub.s32 %s3816_s17, %s4937_s22  ;;  %p3900_p3 = por %p116_p2, %p115_p1 }
   0xb   : > { %p30_p4 = scmp.ge.s32.totalorder %s4939_s23, 2  ;;  %p122_p6 = scmp.eq.s32.totalorder %s2907_s21, 3 }
   0xc   : > { %p2910_p7 = scmp.ge.s32.totalorder %s3824_s19, 1  ;;  %p154_p9 = scmp.lt.s32.totalorder %s3824_s19, 5 }
   0xd   : > { %s4941_s23 = smov (%p30_p4, %s4939_s23), 0  ;;  %p3909_p8 = por %p122_p6, %p121_p5 }
   0xe   : > { %s100_s27 = ssub.s32 %s3820_s18, %s4941_s23  ;;  %s105_s28 = sadd.s32 1, %s3804_s14 }
   0xf   : > { %s102_s29 = sor.u32 %s101_s24, %s100_s27  ;;  %p155_p10 = pnand %p2910_p7, %p154_p9 }
  0x10   : > { %p103_p11 = scmp.eq.s32.totalorder %s102_s29, 0 }
  0x11   : > { %158 = sbr.rel (%p155_p10) target bundleno = 444 (0x1bc), region = 32 }
  0x12   : > { %s3918_s30 = scalar_select %p103_p11, %s3804_s14, %s105_s28  }
  0x18   : > { %v3686_v0 = vld [vmem:[%s4903_s1 + $0x10] sm:$0xff]   ;;  %p178_p12 = scmp.lt.s32.totalorder %s3812_s16, 1  ;;  %v3687_v1 = vld [vmem:[%s4903_s1 + $0x40] sm:$0xff]   ;;  %v3688_v2 = vld [vmem:[%s4903_s1 + $0x18] sm:$0xff]   ;;  %s3209_s21 = smul.u32 96, %s3808_s15  ;;  %vm452_vm3 = vcmask 261120  }
  0x19   : > { %3300 = vmatprep.subr.bf16.mxu1 %v3686_v0  ;;  %3380 = vmatprep.subr.bf16.mxu0 %v3687_v1  ;;  %v3689_v3 = vld [vmem:[%s4903_s1 + $0x48] sm:$0xff]   ;;  %v3938_v4 = vld [vmem:[%s4903_s1] sm:$0xff]   ;;  %vm217_vm0 = vsmask.f32 3328  ;;  %v3946_v5 = vld [vmem:[%s4903_s1 + $0x50] sm:$0xff]   ;;  %vm771_vm4 = vcmask 1042432  }
  0x1a   : > { %s179_s10 = scalar_select %p178_p12, %s3812_s16, 1  ;;  %3301 = vmatpush3.bf16.msra.mxu1 %v3686_v0  ;;  %3381 = vmatpush3.bf16.msra.mxu0 %v3687_v1  ;;  %vm218_vm1 = vsmask.f32 7440  ;;  %vm772_vm5 = vcmask 1046532   ;;  %v4800_v30 = vld [vmem:[%s4904_s2] ss:$0 sm:$0xff] }
  0x1b   : > { %3302 = vmatprep.subr.bf16.mxu1 %v3688_v2  ;;  %3382 = vmatprep.subr.bf16.mxu0 %v3689_v3  ;;  %vm3981_vm2 = vmor %vm217_vm0, %vm218_vm1  ;;  %s3204_s27 = sshll.u32 %s3808_s15, 4  ;;  %s3205_s28 = sshll.u32 %s3812_s16, 5 }
  0x1c   : > { %s3612_s24 = smul.u32 216, %s179_s10  ;;  %vm4138_vm6 = vmor %vm771_vm4, %vm772_vm5  ;;  %s2817_s29 = sadd.s32 %s3205_s28, %s3204_s27 }
  0x1d   : > { %s3206_s15 = sshll.u32 %s2817_s29, 7  ;;  %s3826_s10 = smov [#allocation2]  }
  0x1e   : > { %s182_s5 = scalar_lea.vmem %s4902_s0, %s3612_s24  ;;  %3303 = vmatpush3.bf16.msra.mxu1 %v3688_v2  ;;  %3383 = vmatpush3.bf16.msra.mxu0 %v3689_v3  ;;  %s4841_s6 = scalar_lea.hbm %s4905_s3, %s3206_s15 }
  0x1f   : > { %s3948_s8 = scalar_lea.vmem %s182_s5, %s3209_s21  ;;  %3320 = vmatprep.subr.bf16.mxu1 %v3938_v4  ;;  %3400 = vmatprep.subr.bf16.mxu0 %v3946_v5  ;;  %s3734_s11 = sshll.u32 %s3826_s10, 4  ;;  %s3735_s11 = int_to_ptr.vmem [resolvable:$false] %s3734_s11 }
  0x20   : > { %v3951_v6 = vld [vmem:[%s3948_s8] sm:$0xf]  ;;  %v3954_v7 = vld [vmem:[%s3948_s8 + $0x4] sm:$0xf]  ;;  %v3957_v8 = vld [vmem:[%s3948_s8 + $0x8] sm:$0x1] }
  0x21   : > { %v221_v9 = vshrl.u32 %v3951_v6, 16  ;;  %v224_v10 = vshll.u32 %v3951_v6, 16  ;;  %v230_v11 = vshll.u32 %v3954_v7, 16  ;;  %v234_v12 = vshrl.u32 %v3954_v7, 16  ;;  %v3014_v13 = vld [vmem:[%s3948_s8 + $0xc] sm:$0xf] }
  0x22   : > { %v240_v14 = vshll.u32 %v3957_v8, 16  ;;  %v3968_v15 = vld [vmem:[%s3948_s8 + $0x10] sm:$0xf]  ;;  %v3971_v16 = vld [vmem:[%s3948_s8 + $0x14] sm:$0x1]  ;;  %v1245_v22 = vshrl.u32 %v3014_v13, 16 }
  0x23   : > { %v223_v17 = vrot.slane %v221_v9, 4  ;;  %v226_v18 = vrot.slane %v224_v10, 5  ;;  %v232_v19 = vrot.slane %v230_v11, 5  ;;  %v236_v20 = vrot.slane %v234_v12, 4  ;;  %v3977_v29 = vld [vmem:[%s3948_s8 + $0xc] sm:$0xf] }
  0x24   : > { %v242_v21 = vrot.slane %v240_v14, 5  ;;  %v1248_v23 = vshll.u32 %v3014_v13, 16  ;;  %v1254_v24 = vshll.u32 %v3968_v15, 16  ;;  %v1258_v27 = vshrl.u32 %v3968_v15, 16  ;;  %v3986_v34 = vld [vmem:[%s3948_s8 + $0x10] sm:$0xf] }
  0x25   : > { %v227_v25 = vor.u32 %v226_v18, %v223_v17  ;;  %v237_v26 = vor.u32 %v236_v20, %v232_v19  ;;  %v1264_v28 = vshll.u32 %v3971_v16, 16  ;;  %v1247_v31 = vrot.slane %v1245_v22, 4  ;;  %v3989_v40 = vld [vmem:[%s3948_s8 + $0x14] sm:$0x1]  ;;  %v3017_v51 = vld [vmem:[%s3948_s8 + $0x18] sm:$0xf] }
  0x26   : > { %v1250_v32 = vrot.slane %v1248_v23, 5  ;;  %v1256_v33 = vrot.slane %v1254_v24, 5  ;;  %v1260_v37 = vrot.slane %v1258_v27, 4  ;;  %v245_v41 = vshrl.u32 %v3977_v29, 16  ;;  %v4002_v56 = vld [vmem:[%s3948_s8 + $0x1c] sm:$0xf] }
  0x27   : > { %v228_v35 = vrot.slane %v227_v25, 4  ;;  %v238_v36 = vrot.slane %v237_v26, 4  ;;  %v1266_v39 = vrot.slane %v1264_v28, 5  ;;  %v248_v42 = vshll.u32 %v3977_v29, 16  ;;  %v4010_v61 = vld [vmem:[%s3948_s8 + $0x20] sm:$0x1] }
  0x28   : > { %v1251_v38 = vor.u32 %v1250_v32, %v1247_v31  ;;  %v1261_v45 = vor.u32 %v1260_v37, %v1256_v33  ;;  %v254_v46 = vshll.u32 %v3986_v34, 16  ;;  %v247_v49 = vrot.slane %v245_v41, 4  ;;  %v4018_v17 = vld [vmem:[%s3948_s8 + $0x18] sm:$0xf]  ;;  %v4025_v22 = vld [vmem:[%s3948_s8 + $0x1c] sm:$0xf] }
  0x29   : > { %v233_v43 = vsel %vm3981_vm2, %v228_v35, %v232_v19  ;;  %v243_v44 = vsel %vm3981_vm2, %v238_v36, %v242_v21  ;;  %v250_v50 = vrot.slane %v248_v42, 5  ;;  %v258_v54 = vshrl.u32 %v3986_v34, 16  ;;  %v4033_v31 = vld [vmem:[%s3948_s8 + $0x20] sm:$0x1]  ;;  %v4043_v41 = vld [vmem:[%s3948_s8 + $0x28] sm:$0xf] }
  0x2a   : > { %v2916_v47 = vcombine.low %v233_v43, %v243_v44  ;;  %v1252_v48 = vrot.slane %v1251_v38, 4  ;;  %v1262_v52 = vrot.slane %v1261_v45, 4  ;;  %v256_v53 = vrot.slane %v254_v46, 5  ;;  %v3693_v46 = vld [vmem:[%s4903_s1 + $0x8] sm:$0xff]   ;;  %s3736_s20 = scalar_lea.vmem %s3735_s11, 4096 }
  0x2b   : > { %v264_v55 = vshll.u32 %v3989_v40, 16  ;;  %v1647_v58 = vrot.slane %v3968_v15, 5  ;;  %v1650_v59 = vrot.slane %v3971_v16, 5  ;;  %v251_v60 = vor.u32 %v250_v50, %v247_v49  ;;  %v4173_v16 = vld [vmem:[%s3948_s8 + $0x4c] sm:$0xf] }
  0x2c   : > { %3304 = vmatprep.mubr.msk.bf16.mxu1 %vm452_vm3, %v2916_v47  ;;  %v1257_v57 = vsel %vm3981_vm2, %v1252_v48, %v1256_v33  ;;  %v1267_v62 = vsel %vm3981_vm2, %v1262_v52, %v1266_v39  ;;  %v260_v63 = vrot.slane %v258_v54, 4  ;;  %v1269_v1 = vshrl.u32 %v3017_v51, 16  ;;  %v3020_v39 = vld [vmem:[%s3948_s8 + $0x24] sm:$0xf] }
  0x2d   : > { %v266_v0 = vrot.slane %v264_v55, 5  ;;  %v3038_v2 = vcombine.low %v1257_v57, %v1267_v62  ;;  %v252_v3 = vrot.slane %v251_v60, 4  ;;  %v1272_v9 = vshll.u32 %v3017_v51, 16  ;;  %v3692_v57 = vld [vmem:[%s4903_s1 + $0x58] sm:$0xff]  }
  0x2e   : > { %v1278_v10 = vshll.u32 %v4002_v56, 16  ;;  %v261_v11 = vor.u32 %v260_v63, %v256_v53  ;;  %v1271_v12 = vrot.slane %v1269_v1, 4  ;;  %v1282_v13 = vshrl.u32 %v4002_v56, 16  ;;  %v4063_v1 = vld [vmem:[%s3948_s8 + $0x24] sm:$0xf] }
  0x2f   : > { %v1288_v14 = vshll.u32 %v4010_v61, 16  ;;  %3384 = vmatprep.mubr.msk.bf16.mxu0 %vm452_vm3, %v3038_v2  ;;  %v257_v18 = vsel %vm3981_vm2, %v252_v3, %v256_v53  ;;  %v1274_v19 = vrot.slane %v1272_v9, 5  ;;  %v1654_v21 = vrot.slane %v4002_v56, 5  ;;  %v4053_v53 = vld [vmem:[%s3948_s8 + $0x2c] sm:$0x1] }
  0x30   : > { %v1280_v20 = vrot.slane %v1278_v10, 5  ;;  %v262_v23 = vrot.slane %v261_v11, 4  ;;  %v1284_v24 = vrot.slane %v1282_v13, 4  ;;  %v1657_v26 = vrot.slane %v4010_v61, 5  ;;  %v4066_v11 = vld [vmem:[%s3948_s8 + $0x28] sm:$0xf] }
  0x31   : > { %v1290_v25 = vrot.slane %v1288_v14, 5  ;;  %v1275_v27 = vor.u32 %v1274_v19, %v1271_v12  ;;  %v4030_v28 = vrot.slane %v1654_v21, 4  ;;  %v269_v32 = vshrl.u32 %v4018_v17, 16 }
  0x32   : > { %v272_v33 = vshll.u32 %v4018_v17, 16  ;;  %v267_v35 = vsel %vm3981_vm2, %v262_v23, %v266_v0  ;;  %v1285_v36 = vor.u32 %v1284_v24, %v1280_v20  ;;  %v278_v37 = vshll.u32 %v4025_v22, 16  ;;  %v4079_v23 = vld [vmem:[%s3948_s8 + $0x2c] sm:$0x1] }
  0x33   : > { %v282_v38 = vshrl.u32 %v4025_v22, 16  ;;  %v2917_v42 = vcombine.low %v257_v18, %v267_v35  ;;  %v1276_v43 = vrot.slane %v1275_v27, 4  ;;  %v271_v44 = vrot.slane %v269_v32, 4 }
  0x34   : > { %v274_v45 = vrot.slane %v272_v33, 5  ;;  %v1286_v47 = vrot.slane %v1285_v36, 4  ;;  %v280_v48 = vrot.slane %v278_v37, 5  ;;  %v288_v50 = vshll.u32 %v4033_v31, 16  ;;  %v3023_v36 = vld [vmem:[%s3948_s8 + $0x30] sm:$0xf] }
  0x35   : > { %v284_v49 = vrot.slane %v282_v38, 4  ;;  %3305 = vmatmul.mubr.msk.bf16.vlgmr.msra.gmra.mrb[0].mxu1 %vm452_vm3, %v2917_v42  ;;  %v1281_v51 = vsel %vm3981_vm2, %v1276_v43, %v1280_v20  ;;  %v1293_v54 = vshrl.u32 %v3020_v39, 16  ;;  %v1296_v55 = vshll.u32 %v3020_v39, 16  ;;  %v4089_v43 = vld [vmem:[%s3948_s8 + $0x34] sm:$0xf] }
  0x36   : > { %v275_v52 = vor.u32 %v274_v45, %v271_v44  ;;  %3321 = vmatpush3.bf16.msra.mxu1 %v3938_v4  ;;  %v1291_v60 = vsel %vm3981_vm2, %v1286_v47, %v1290_v25  ;;  %v290_v63 = vrot.slane %v288_v50, 5  ;;  %v1302_v0 = vshll.u32 %v4043_v41, 16  ;;  %v4071_v4 = vld [vmem:[%s4903_s1 + $0x20] sm:$0xff]   ;;  %v4103_v50 = vld [vmem:[%s3948_s8 + $0x38] sm:$0x1] }
  0x37   : > { %v285_v62 = vor.u32 %v284_v49, %v280_v48  ;;  %v3039_v2 = vcombine.low %v1281_v51, %v1291_v60  ;;  %v1295_v9 = vrot.slane %v1293_v54, 4  ;;  %v1298_v10 = vrot.slane %v1296_v55, 5  ;;  %3322 = vmatprep.subr.bf16.mxu1 %v3693_v46 }
  0x38   : > { %v276_v3 = vrot.slane %v275_v52, 4  ;;  %v1304_v13 = vrot.slane %v1302_v0, 5  ;;  %v1306_v14 = vshrl.u32 %v4043_v41, 16  ;;  %v1312_v18 = vshll.u32 %v4053_v53, 16 }
  0x39   : > { %v286_v12 = vrot.slane %v285_v62, 4  ;;  %3385 = vmatmul.mubr.msk.bf16.vlgmr.msra.gmra.mrb[0].mxu0 %vm452_vm3, %v3039_v2  ;;  %v1299_v20 = vor.u32 %v1298_v10, %v1295_v9  ;;  %v293_v24 = vshrl.u32 %v4063_v1, 16  ;;  %v296_v25 = vshll.u32 %v4063_v1, 16  ;;  %v4111_v10 = vld [vmem:[%s3948_s8 + $0x34] sm:$0xf] }
  0x3a   : > { %v281_v19 = vsel %vm3981_vm2, %v276_v3, %v280_v48  ;;  %3401 = vmatpush3.bf16.msra.mxu0 %v3946_v5  ;;  %v1308_v32 = vrot.slane %v1306_v14, 4  ;;  %v1314_v33 = vrot.slane %v1312_v18, 5  ;;  %v302_v35 = vshll.u32 %v4066_v11, 16  ;;  %3323 = vmatpush3.bf16.msra.mxu1 %v3693_v46  ;;  %v4094_v5 = vld [vmem:[%s4903_s1 + $0x60] sm:$0xff]  }
  0x3b   : > { %v291_v27 = vsel %vm3981_vm2, %v286_v12, %v290_v63  ;;  %v1300_v38 = vrot.slane %v1299_v20, 4  ;;  %3402 = vmatprep.subr.bf16.mxu0 %v3692_v57  ;;  %v295_v39 = vrot.slane %v293_v24, 4  ;;  %v298_v42 = vrot.slane %v296_v25, 5  ;;  %3340 = vmatprep.subr.bf16.mxu1 %v4071_v4  ;;  %v4107_v63 = vld [vmem:[%s3948_s8 + $0x30] sm:$0xf] }
  0x3c   : > { %v2918_v37 = vcombine.low %v281_v19, %v291_v27  ;;  %v1309_v44 = vor.u32 %v1308_v32, %v1304_v13  ;;  %v304_v45 = vrot.slane %v302_v35, 5  ;;  %v306_v46 = vshrl.u32 %v4066_v11, 16  ;;  %v4120_v25 = vld [vmem:[%s3948_s8 + $0x38] sm:$0x1]  ;;  %v3056_v27 = vld [vmem:[%s3948_s8 + $0xc] sm:$0xe] }
  0x3d   : > { %v312_v47 = vshll.u32 %v4079_v23, 16  ;;  %v1305_v48 = vsel %vm3981_vm2, %v1300_v38, %v1304_v13  ;;  %v299_v49 = vor.u32 %v298_v42, %v295_v39  ;;  %v1317_v51 = vshrl.u32 %v3023_v36, 16 }
  0x3e   : > { %3308 = vmatprep.mubr.msk.bf16.mxu1 %vm452_vm3, %v2918_v37  ;;  %v1320_v52 = vshll.u32 %v3023_v36, 16  ;;  %v1310_v54 = vrot.slane %v1309_v44, 4  ;;  %v308_v55 = vrot.slane %v306_v46, 4  ;;  %v1326_v62 = vshll.u32 %v4089_v43, 16  ;;  %3403 = vmatpush3.bf16.msra.mxu0 %v3692_v57 }
  0x3f   : > { %v314_v60 = vrot.slane %v312_v47, 5  ;;  %v300_v0 = vrot.slane %v299_v49, 4  ;;  %v1319_v2 = vrot.slane %v1317_v51, 4  ;;  %v1330_v9 = vshrl.u32 %v4089_v43, 16  ;;  %3420 = vmatprep.subr.bf16.mxu0 %v4094_v5 }
  0x40   : > { %v1322_v3 = vrot.slane %v1320_v52, 5  ;;  %v1315_v12 = vsel %vm3981_vm2, %v1310_v54, %v1314_v33  ;;  %v309_v13 = vor.u32 %v308_v55, %v304_v45  ;;  %v1328_v14 = vrot.slane %v1326_v62, 5  ;;  %v4126_v33 = vld [vmem:[%s3948_s8 + $0x3c] sm:$0xf] }
  0x41   : > { %v1336_v57 = vshll.u32 %v4103_v50, 16  ;;  %v3040_v18 = vcombine.low %v1305_v48, %v1315_v12  ;;  %v305_v19 = vsel %vm3981_vm2, %v300_v0, %v304_v45  ;;  %v1332_v24 = vrot.slane %v1330_v9, 4 }
  0x42   : > { %v1323_v20 = vor.u32 %v1322_v3, %v1319_v2  ;;  %v310_v32 = vrot.slane %v309_v13, 4  ;;  %v317_v36 = vshrl.u32 %v4107_v63, 16  ;;  %v320_v37 = vshll.u32 %v4107_v63, 16  ;;  %v4143_v3 = vld [vmem:[%s3948_s8 + $0x40] sm:$0xf] }
  0x43   : > { %v1338_v35 = vrot.slane %v1336_v57, 5  ;;  %3388 = vmatprep.mubr.msk.bf16.mxu0 %vm452_vm3, %v3040_v18  ;;  %v1333_v39 = vor.u32 %v1332_v24, %v1328_v14  ;;  %v326_v42 = vshll.u32 %v4111_v10, 16  ;;  %v330_v44 = vshrl.u32 %v4111_v10, 16  ;;  %v4157_v24 = vld [vmem:[%s3948_s8 + $0x44] sm:$0x1] }
  0x44   : > { %v1324_v38 = vrot.slane %v1323_v20, 4  ;;  %v315_v45 = vsel %vm3981_vm2, %v310_v32, %v314_v60  ;;  %v319_v46 = vrot.slane %v317_v36, 4  ;;  %v322_v47 = vrot.slane %v320_v37, 5 }
  0x45   : > { %v336_v48 = vshll.u32 %v4120_v25, 16  ;;  %v2919_v49 = vcombine.low %v305_v19, %v315_v45  ;;  %v1334_v52 = vrot.slane %v1333_v39, 4  ;;  %v328_v54 = vrot.slane %v326_v42, 5 }
  0x46   : > { %v1329_v51 = vsel %vm3981_vm2, %v1324_v38, %v1328_v14  ;;  %v323_v62 = vor.u32 %v322_v47, %v319_v46  ;;  %v332_v60 = vrot.slane %v330_v44, 4  ;;  %v3064_v2 = vrot.slane %v3056_v27, 9  ;;  %v3057_v27 = vld [vmem:[%s3948_s8 + $0x18] sm:$0xe]  ;;  %v4166_v38 = vld [vmem:[%s3948_s8 + $0x48] sm:$0xf] }
  0x47   : > { %v338_v0 = vrot.slane %v336_v48, 5  ;;  %3309 = vmatmul.mubr.msk.bf16.gmra.mrb[4].mxu1 %vm452_vm3, %v2919_v49  ;;  %v1339_v9 = vsel %vm3981_vm2, %v1334_v52, %v1338_v35  ;;  %v1649_v12 = vrot.slane %v1647_v58, 4  ;;  %v341_v13 = vshrl.u32 %v4126_v33, 16  ;;  %v4176_v44 = vld [vmem:[%s3948_s8 + $0x50] sm:$0x1] }
  0x48   : > { %v344_v14 = vshll.u32 %v4126_v33, 16  ;;  %v3041_v57 = vcombine.low %v1329_v51, %v1339_v9  ;;  %v324_v18 = vrot.slane %v323_v62, 4  ;;  %v333_v19 = vor.u32 %v332_v60, %v328_v54  ;;  %v3058_v48 = vld [vmem:[%s3948_s8 + $0x24] sm:$0xe] }
  0x49   : > { %v1648_v20 = vsel %vm4138_vm6, %v3064_v2, %v1647_v58  ;;  %v1651_v32 = vsel %vm4138_vm6, %v1649_v12, %v1650_v59  ;;  %v343_v35 = vrot.slane %v341_v13, 4  ;;  %v350_v37 = vshll.u32 %v4143_v3, 16 }
  0x4a   : > { %v346_v36 = vrot.slane %v344_v14, 5  ;;  %3389 = vmatmul.mubr.msk.bf16.gmra.mrb[4].mxu0 %vm452_vm3, %v3041_v57  ;;  %v329_v15 = vsel %vm3981_vm2, %v324_v18, %v328_v54  ;;  %v334_v58 = vrot.slane %v333_v19, 4  ;;  %v3072_v39 = vcombine.low %v1648_v20, %v1651_v32  ;;  %v4195_v14 = vld [vmem:[%s3948_s8 + $0x54] sm:$0xf]  ;;  %v3697_v18 = vld [vmem:[%s4903_s1 + $0x68] sm:$0xff]  }
  0x4b   : > { %v354_v42 = vshrl.u32 %v4143_v3, 16  ;;  %v352_v45 = vrot.slane %v350_v37, 5  ;;  %v360_v46 = vshll.u32 %v4157_v24, 16  ;;  %v3065_v47 = vrot.slane %v3057_v27, 9 }
  0x4c   : > { %v347_v59 = vor.u32 %v346_v36, %v343_v35  ;;  %v339_v49 = vsel %vm3981_vm2, %v334_v58, %v338_v0  ;;  %3404 = vmatprep.mubr.msk.bf16.mxu0 %vm452_vm3, %v3072_v39  ;;  %v1658_v52 = vsel %vm4138_vm6, %v4030_v28, %v1657_v26  ;;  %v365_v54 = vshrl.u32 %v4166_v38, 16  ;;  %v4212_v58 = vld [vmem:[%s3948_s8 + $0x5c] sm:$0x1] }
  0x4d   : > { %v356_v51 = vrot.slane %v354_v42, 4  ;;  %v2920_v62 = vcombine.low %v329_v15, %v339_v49  ;;  %v362_v2 = vrot.slane %v360_v46, 5  ;;  %v1655_v0 = vsel %vm4138_vm6, %v3065_v47, %v1654_v21  ;;  %v4204_v21 = vld [vmem:[%s3948_s8 + $0x58] sm:$0xf] }
  0x4e   : > { %v348_v60 = vrot.slane %v347_v59, 4  ;;  %v3073_v12 = vcombine.low %v1655_v0, %v1658_v52  ;;  %v367_v13 = vrot.slane %v365_v54, 4  ;;  %v368_v61 = vshll.u32 %v4166_v38, 16 }
  0x4f   : > { %v357_v9 = vor.u32 %v356_v51, %v352_v45  ;;  %3312 = vmatprep.mubr.msk.bf16.mxu1 %vm452_vm3, %v2920_v62  ;;  %v374_v28 = vshll.u32 %v4173_v16, 16  ;;  %v378_v56 = vshrl.u32 %v4173_v16, 16  ;;  %v384_v57 = vshll.u32 %v4176_v44, 16  ;;  %v3060_v62 = vld [vmem:[%s3948_s8 + $0x3c] sm:$0xe] }
  0x50   : > { %v353_v26 = vsel %vm3981_vm2, %v348_v60, %v352_v45  ;;  %v370_v20 = vrot.slane %v368_v61, 5  ;;  %v3066_v27 = vrot.slane %v3058_v48, 9  ;;  %v1661_v32 = vrot.slane %v4043_v41, 5  ;;  %v3059_v48 = vld [vmem:[%s3948_s8 + $0x30] sm:$0xe] }
  0x51   : > { %v358_v19 = vrot.slane %v357_v9, 4  ;;  %v376_v35 = vrot.slane %v374_v28, 5  ;;  %v380_v36 = vrot.slane %v378_v56, 4  ;;  %v386_v37 = vrot.slane %v384_v57, 5 }
  0x52   : > { %v1664_v15 = vrot.slane %v4053_v53, 5  ;;  %3405 = vmatmul.mubr.msk.bf16.vlgmr.msra.gmra.mrb[0].mxu0 %vm452_vm3, %v3073_v12  ;;  %v371_v42 = vor.u32 %v370_v20, %v367_v13  ;;  %v1662_v59 = vsel %vm4138_vm6, %v3066_v27, %v1661_v32  ;;  %v1663_v45 = vrot.slane %v1661_v32, 4  ;;  %v4235_v12 = vld [vmem:[%s3948_s8 + $0x40] sm:$0xf]  ;;  %v4238_v13 = vld [vmem:[%s3948_s8 + $0x44] sm:$0x1] }
  0x53   : > { %v363_v39 = vsel %vm3981_vm2, %v358_v19, %v362_v2  ;;  %3421 = vmatpush3.bf16.msra.mxu0 %v4094_v5  ;;  %v381_v46 = vor.u32 %v380_v36, %v376_v35  ;;  %v389_v53 = vshrl.u32 %v4195_v14, 16  ;;  %v392_v47 = vshll.u32 %v4195_v14, 16  ;;  %v4231_v5 = vld [vmem:[%s4903_s1 + $0x70] sm:$0xff]  }
  0x54   : > { %v2921_v41 = vcombine.low %v353_v26, %v363_v39  ;;  %v372_v49 = vrot.slane %v371_v42, 4  ;;  %v1665_v51 = vsel %vm4138_vm6, %v1663_v45, %v1664_v15  ;;  %v398_v52 = vshll.u32 %v4204_v21, 16  ;;  %3422 = vmatprep.subr.bf16.mxu0 %v3697_v18  ;;  %v4252_v45 = vld [vmem:[%s3948_s8 + $0x4c] sm:$0xf] }
  0x55   : > { %v402_v54 = vshrl.u32 %v4204_v21, 16  ;;  %v382_v60 = vrot.slane %v381_v46, 4  ;;  %v3074_v2 = vcombine.low %v1662_v59, %v1665_v51  ;;  %v391_v0 = vrot.slane %v389_v53, 4 }
  0x56   : > { %3313 = vmatmul.mubr.msk.bf16.gmra.mrb[8].mxu1 %vm452_vm3, %v2921_v41  ;;  %v394_v9 = vrot.slane %v392_v47, 5  ;;  %v377_v61 = vsel %vm3981_vm2, %v372_v49, %v376_v35  ;;  %v400_v26 = vrot.slane %v398_v52, 5  ;;  %v408_v56 = vshll.u32 %v4212_v58, 16  ;;  %v4258_v41 = vld [vmem:[%s3948_s8 + $0x50] sm:$0x1] }
  0x57   : > { %v404_v28 = vrot.slane %v402_v54, 4  ;;  %v387_v57 = vsel %vm3981_vm2, %v382_v60, %v386_v37  ;;  %3408 = vmatprep.mubr.msk.bf16.mxu0 %vm452_vm3, %v3074_v2  ;;  %v3067_v20 = vrot.slane %v3059_v48, 9  ;;  %v1668_v27 = vrot.slane %v4089_v43, 5  ;;  %3423 = vmatpush3.bf16.msra.mxu0 %v3697_v18  ;;  %v3061_v48 = vld [vmem:[%s3948_s8 + $0x48] sm:$0xe] }
  0x58   : > { %v395_v19 = vor.u32 %v394_v9, %v391_v0  ;;  %v2922_v32 = vcombine.low %v377_v61, %v387_v57  ;;  %v410_v15 = vrot.slane %v408_v56, 5  ;;  %v1671_v35 = vrot.slane %v4103_v50, 5  ;;  %3440 = vmatprep.subr.bf16.mxu0 %v4231_v5  ;;  %v4275_v2 = vld [vmem:[%s3948_s8 + $0x5c] sm:$0x1]  ;;  %v3062_v0 = vld [vmem:[%s3948_s8 + $0x54] sm:$0xe] }
  0x59   : > { %v405_v36 = vor.u32 %v404_v28, %v400_v26  ;;  %v1669_v37 = vsel %vm4138_vm6, %v3067_v20, %v1668_v27  ;;  %v1670_v42 = vrot.slane %v1668_v27, 4  ;;  %v3068_v59 = vrot.slane %v3060_v62, 9  ;;  %v4272_v62 = vld [vmem:[%s3948_s8 + $0x58] sm:$0xf]  ;;  %4917 = vst [vmem:[#allocation5_spill] sm:$0xff] %v4275_v2 }
  0x5a   : > { %v396_v39 = vrot.slane %v395_v19, 4  ;;  %3316 = vmatprep.mubr.msk.bf16.mxu1 %vm452_vm3, %v2922_v32  ;;  %v1675_v18 = vrot.slane %v4235_v12, 5  ;;  %v1678_v50 = vrot.slane %v4238_v13, 5  ;;  %v2934_v47 = vcombine.low %v3951_v6, %v3954_v7  ;;  %v4284_v28 = vld [vmem:[%s3948_s8 + $0x64] sm:$0xf] }
  0x5b   : > { %v406_v43 = vrot.slane %v405_v36, 4  ;;  %v1672_v53 = vsel %vm4138_vm6, %v1670_v42, %v1671_v35  ;;  %v3069_v9 = vrot.slane %v3061_v48, 9  ;;  %v1682_v61 = vrot.slane %v4252_v45, 5  ;;  %4918 = vst [vmem:[#allocation6_spill] sm:$0xff] %v4284_v28  ;;  %v4288_v57 = vld [vmem:[%s3948_s8 + $0x68] sm:$0x1] }
  0x5c   : > { %v401_v46 = vsel %vm3981_vm2, %v396_v39, %v400_v26  ;;  %v3075_v51 = vcombine.low %v1669_v37, %v1672_v53  ;;  %v1676_v52 = vsel %vm4138_vm6, %v3068_v59, %v1675_v18  ;;  %v1677_v54 = vrot.slane %v1675_v18, 4  ;;  %4919 = vst [vmem:[#allocation7_spill] sm:$0xff] %v4288_v57  ;;  %v3063_v36 = vld [vmem:[%s3948_s8 + $0x60] sm:$0xe] }
  0x5d   : > { %v411_v49 = vsel %vm3981_vm2, %v406_v43, %v410_v15  ;;  %v1685_v26 = vrot.slane %v4258_v41, 5  ;;  %v1683_v19 = vsel %vm4138_vm6, %v3069_v9, %v1682_v61  ;;  %v1684_v20 = vrot.slane %v1682_v61, 4  ;;  %v748_v43 = vld [vmem:[%s3948_s8 + $0xc] sm:$0xe]  ;;  %v751_v61 = vld [vmem:[%s3948_s8 + $0x30] sm:$0xe] }
  0x5e   : > { %v2923_v60 = vcombine.low %v401_v46, %v411_v49  ;;  %3409 = vmatmul.mubr.msk.bf16.gmra.mrb[4].mxu0 %vm452_vm3, %v3075_v51  ;;  %v1679_v6 = vsel %vm4138_vm6, %v1677_v54, %v1678_v50  ;;  %v3070_v27 = vrot.slane %v3062_v0, 9  ;;  %v1689_v32 = vrot.slane %v4272_v62, 5 }
  0x5f   : > { %v3076_v56 = vcombine.low %v1676_v52, %v1679_v6  ;;  %v783_v15 = vrot.slane %v3986_v34, 5  ;;  %v1692_v35 = vrot.slane %v4275_v2, 5  ;;  %v1686_v39 = vsel %vm4138_vm6, %v1684_v20, %v1685_v26  ;;  %v4601_v2 = vld [vmem:[%s3948_s8 + $0x70] sm:$0xf] }
  0x60   : > { %3317 = vmatmul.mubr.msk.bf16.gmra.mrb[12].mxu1 %vm452_vm3, %v2923_v60  ;;  %v1690_v37 = vsel %vm4138_vm6, %v3070_v27, %v1689_v32  ;;  %v1691_v42 = vrot.slane %v1689_v32, 4  ;;  %v1696_v59 = vrot.slane %v4284_v28, 5  ;;  %v2935_v18 = vcombine.low %v3977_v29, %v3986_v34  ;;  %v3702_v29 = vld [vmem:[%s4903_s1 + $0x28] sm:$0xff]   ;;  %v750_v34 = vld [vmem:[%s3948_s8 + $0x24] sm:$0xe] }
  0x61   : > { %3324 = vmatprep.mubr.msk.bf16.mxu1 %vm452_vm3, %v2934_v47  ;;  %3412 = vmatprep.mubr.msk.bf16.mxu0 %vm452_vm3, %v3076_v56  ;;  %v3077_v50 = vcombine.low %v1683_v19, %v1686_v39  ;;  %v3071_v46 = vrot.slane %v3063_v36, 9  ;;  %v1699_v53 = vrot.slane %v4288_v57, 5  ;;  %v749_v47 = vld [vmem:[%s3948_s8 + $0x18] sm:$0xe]  ;;  %v786_v48 = vrot.slane %v3989_v40, 5 }
  0x62   : > { %v2936_v49 = vcombine.low %v4018_v17, %v4025_v22  ;;  %v1693_v51 = vsel %vm4138_vm6, %v1691_v42, %v1692_v35  ;;  %v1698_v52 = vrot.slane %v1696_v59, 4  ;;  %v2953_v60 = vrot.slane %v748_v43, 9  ;;  %v3147_v57 = vld [vmem:[%s3948_s8 + $0x6c] sm:$0xf] }
  0x63   : > { %v3078_v54 = vcombine.low %v1690_v37, %v1693_v51  ;;  %v785_v0 = vrot.slane %v783_v15, 4  ;;  %v2954_v6 = vrot.slane %v749_v47, 9  ;;  %v1697_v40 = vsel %vm4138_vm6, %v3071_v46, %v1696_v59  ;;  %v3703_v37 = vld [vmem:[%s3948_s8 + $0x18] sm:$0xff]  }
  0x64   : > { %v1700_v17 = vsel %vm4138_vm6, %v1698_v52, %v1699_v53  ;;  %v790_v9 = vrot.slane %v4025_v22, 5  ;;  %v4330_v26 = vsel %vm4138_vm6, %v2953_v60, %v783_v15  ;;  %v793_v19 = vrot.slane %v4033_v31, 5  ;;  %v4340_v22 = vld [vmem:[%s4903_s1 + $0x30] sm:$0xff]   ;;  %v3126_v47 = vld [vmem:[%s3948_s8 + $0x18] sm:$0xf] }
  0x65   : > { %v4334_v56 = vsel %vm4138_vm6, %v785_v0, %v786_v48  ;;  %v2955_v20 = vrot.slane %v750_v34, 9  ;;  %v3079_v36 = vcombine.low %v1697_v40, %v1700_v17  ;;  %v797_v15 = vrot.slane %v4066_v11, 5 }
  0x66   : > { %3413 = vmatmul.mubr.msk.bf16.gmra.mrb[8].mxu0 %vm452_vm3, %v3077_v50  ;;  %v4346_v27 = vsel %vm4138_vm6, %v2954_v6, %v790_v9  ;;  %v792_v32 = vrot.slane %v790_v9, 4  ;;  %v800_v31 = vrot.slane %v4079_v23, 5  ;;  %v2956_v35 = vrot.slane %v751_v61, 9  ;;  %v752_v50 = vld [vmem:[%s3948_s8 + $0x3c] sm:$0xe] }
  0x67   : > { %3416 = vmatprep.mubr.msk.bf16.mxu0 %vm452_vm3, %v3078_v54  ;;  %v2937_v39 = vcombine.low %v4063_v1, %v4066_v11  ;;  %v804_v59 = vrot.slane %v4111_v10, 5  ;;  %v807_v43 = vrot.slane %v4120_v25, 5  ;;  %v4365_v1 = vsel %vm4138_vm6, %v2955_v20, %v797_v15  ;;  %v4394_v54 = vld [vmem:[%s3948_s8 + $0x1c] sm:$0xf]  ;;  %v753_v9 = vld [vmem:[%s3948_s8 + $0x48] sm:$0xe] }
  0x68   : > { %3325 = vmatmul.mubr.msk.bf16.vlgmr.msra.gmra.mrb[0].mxu1 %vm452_vm3, %v2935_v18  ;;  %v4355_v42 = vsel %vm4138_vm6, %v792_v32, %v793_v19  ;;  %v2938_v18 = vcombine.low %v4107_v63, %v4111_v10  ;;  %v799_v11 = vrot.slane %v797_v15, 4  ;;  %v776_v46 = vrot.slane %v3954_v7, 5  ;;  %v747_v10 = vld [vmem:[%s3948_s8] sm:$0xe]  ;;  %v3713_v15 = vld [vmem:[%s4903_s1 + $0x78] sm:$0xff]  }
  0x69   : > { %3341 = vmatpush3.bf16.msra.mxu1 %v4071_v4  ;;  %3328 = vmatprep.mubr.msk.bf16.mxu1 %vm452_vm3, %v2936_v49  ;;  %v2961_v4 = vcombine.low %v4330_v26, %v4334_v56  ;;  %v2962_v23 = vcombine.low %v4346_v27, %v4355_v42  ;;  %v4372_v25 = vsel %vm4138_vm6, %v2956_v35, %v804_v59  ;;  %v806_v63 = vrot.slane %v804_v59, 4 }
  0x6a   : > { %3342 = vmatprep.subr.bf16.mxu1 %v3702_v29  ;;  %v4378_v53 = vsel %vm4138_vm6, %v799_v11, %v800_v31  ;;  %v2957_v49 = vrot.slane %v752_v50, 9  ;;  %v779_v51 = vrot.slane %v3957_v8, 5  ;;  %v778_v34 = vrot.slane %v776_v46, 4  ;;  %v3706_v8 = vld [vmem:[%s3948_s8 + $0x24] sm:$0xff]   ;;  %v4421_v31 = vld [vmem:[%s3948_s8 + $0x20] sm:$0x1] }
  0x6b   : > { %v2963_v7 = vcombine.low %v4365_v1, %v4378_v53  ;;  %v4387_v48 = vsel %vm4138_vm6, %v806_v63, %v807_v43  ;;  %v811_v60 = vrot.slane %v4143_v3, 5  ;;  %v814_v0 = vrot.slane %v4157_v24, 5  ;;  %v4445_v63 = vld [vmem:[%s3948_s8 + $0x28] sm:$0xf] }
  0x6c   : > { %v2939_v6 = vcombine.low %v4126_v33, %v4143_v3  ;;  %v2116_v40 = vshrl.u32 %v3126_v47, 16  ;;  %v2119_v17 = vshll.u32 %v3126_v47, 16  ;;  %v2125_v61 = vshll.u32 %v4394_v54, 16  ;;  %v3710_v47 = vld [vmem:[%s3948_s8 + $0x3c] sm:$0xff]  }
  0x6d   : > { %3343 = vmatpush3.bf16.msra.mxu1 %v3702_v29  ;;  %v2952_v29 = vrot.slane %v747_v10, 9  ;;  %v2129_v19 = vshrl.u32 %v4394_v54, 16  ;;  %v4406_v20 = vsel %vm4138_vm6, %v2957_v49, %v811_v60  ;;  %v813_v32 = vrot.slane %v811_v60, 4 }
  0x6e   : > { %3360 = vmatprep.subr.bf16.mxu1 %v4340_v22  ;;  %3417 = vmatmul.mubr.msk.bf16.gmra.mrb[12].mxu0 %vm452_vm3, %v3079_v36  ;;  %v2940_v24 = vcombine.low %v4166_v38, %v4173_v16  ;;  %v3708_v36 = vld [vmem:[%s3948_s8 + $0x30] sm:$0xff]   ;;  %v780_v3 = vsel %vm4138_vm6, %v778_v34, %v779_v51  ;;  %v3129_v38 = vld [vmem:[%s3948_s8 + $0x24] sm:$0xf]  ;;  %v2121_v59 = vrot.slane %v2119_v17, 5  ;;  %v4434_v11 = vrot.slane %v2125_v61, 5  ;;  %v3712_v17 = vld [vmem:[%s3948_s8 + $0x48] sm:$0xff]  }
  0x6f   : > { %3424 = vmatprep.mubr.msk.bf16.mxu0 %vm452_vm3, %v3703_v37  ;;  %v4413_v33 = vsel %vm4138_vm6, %v2952_v29, %v776_v46  ;;  %v4425_v35 = vsel %vm4138_vm6, %v813_v32, %v814_v0  ;;  %v2118_v37 = vrot.slane %v2116_v40, 4  ;;  %v2131_v50 = vrot.slane %v2129_v19, 4  ;;  %v3132_v29 = vld [vmem:[%s3948_s8 + $0x30] sm:$0xf]  ;;  %v754_v34 = vld [vmem:[%s3948_s8 + $0x54] sm:$0xe] }
  0x70   : > { %3329 = vmatmul.mubr.msk.bf16.gmra.mrb[4].mxu1 %vm452_vm3, %v2937_v39  ;;  %v2958_v39 = vrot.slane %v753_v9, 9  ;;  %v821_v46 = vrot.slane %v4176_v44, 5  ;;  %v2941_v44 = vcombine.low %v4195_v14, %v4204_v21  ;;  %v2960_v49 = vcombine.low %v4413_v33, %v780_v3  ;;  %v4463_v40 = vld [vmem:[%s3948_s8 + $0x34] sm:$0xf] }
  0x71   : > { %3332 = vmatprep.mubr.msk.bf16.mxu1 %vm452_vm3, %v2938_v18  ;;  %v818_v18 = vrot.slane %v4173_v16, 5  ;;  %v4442_v16 = vld [vmem:[%s4903_s1 + $0x80] sm:$0xff]   ;;  %v2135_v51 = vshll.u32 %v4421_v31, 16  ;;  %v2122_v60 = vor.u32 %v2121_v59, %v2118_v37  ;;  %v2140_v0 = vshrl.u32 %v3129_v38, 16  ;;  %v4478_v59 = vld [vmem:[%s3948_s8 + $0x2c] sm:$0x1] }
  0x72   : > { %v2132_v14 = vor.u32 %v2131_v50, %v4434_v11  ;;  %v2149_v9 = vshll.u32 %v4445_v63, 16  ;;  %v2153_v61 = vshrl.u32 %v4445_v63, 16  ;;  %v2164_v32 = vshrl.u32 %v3132_v29, 16 }
  0x73   : > { %v820_v10 = vrot.slane %v818_v18, 4  ;;  %v825_v33 = vrot.slane %v4204_v21, 5  ;;  %v2173_v3 = vshll.u32 %v4463_v40, 16  ;;  %v2137_v37 = vrot.slane %v2135_v51, 5 }
  0x74   : > { %v2133_v21 = vrot.slane %v2132_v14, 4  ;;  %v2155_v51 = vrot.slane %v2153_v61, 4  ;;  %v3714_v14 = vld [vmem:[%s3948_s8 + $0x54] sm:$0xff]  }
  0x75   : > { %v827_v50 = vrot.slane %v825_v33, 4 }
  0x76   : > { %3425 = vmatmul.mubr.msk.bf16.vlgmr.msra.gmra.mrb[0].mxu0 %vm452_vm3, %v3706_v8  ;;  %v4460_v8 = vsel %vm4138_vm6, %v820_v10, %v821_v46  ;;  %v4486_v10 = vrot.slane %v2149_v9, 5  ;;  %v4503_v9 = vld [vmem:[%s3948_s8 + $0x40] sm:$0xf] }
  0x77   : > { %3441 = vmatpush3.bf16.msra.mxu0 %v4231_v5  ;;  %3428 = vmatprep.mubr.msk.bf16.mxu0 %vm452_vm3, %v3708_v36  ;;  %v4449_v5 = vsel %vm4138_vm6, %v2958_v39, %v818_v18  ;;  %v2959_v36 = vrot.slane %v754_v34, 9  ;;  %v2123_v39 = vrot.slane %v2122_v60, 4  ;;  %v3135_v60 = vld [vmem:[%s3948_s8 + $0x3c] sm:$0xf] }
  0x78   : > { %3333 = vmatmul.mubr.msk.bf16.gmra.mrb[8].mxu1 %vm452_vm3, %v2939_v6  ;;  %3442 = vmatprep.subr.bf16.mxu0 %v3713_v15  ;;  %v2143_v6 = vshll.u32 %v3129_v38, 16  ;;  %v828_v38 = vrot.slane %v4212_v58, 5  ;;  %v2142_v58 = vrot.slane %v2140_v0, 4 }
  0x79   : > { %3336 = vmatprep.mubr.msk.bf16.mxu1 %vm452_vm3, %v2940_v24  ;;  %v2167_v24 = vshll.u32 %v3132_v29, 16  ;;  %v4482_v18 = vsel %vm4138_vm6, %v2959_v36, %v825_v33  ;;  %v2166_v29 = vrot.slane %v2164_v32, 4  ;;  %v2128_v61 = vsel %vm3981_vm2, %v2123_v39, %v4434_v11  ;;  %v3138_v33 = vld [vmem:[%s3948_s8 + $0x48] sm:$0xf]  ;;  %v3717_v11 = vld [vmem:[%s4903_s1 + $0x38] sm:$0xff]  }
  0x7a   : > { %v2145_v46 = vrot.slane %v2143_v6, 5  ;;  %v2138_v32 = vsel %vm3981_vm2, %v2133_v21, %v2137_v37  ;;  %v2159_v36 = vshll.u32 %v4478_v59, 16  ;;  %v2188_v6 = vshrl.u32 %v3135_v60, 16 }
  0x7b   : > { %3443 = vmatpush3.bf16.msra.mxu0 %v3713_v15  ;;  %v2177_v15 = vshrl.u32 %v4463_v40, 16  ;;  %v2169_v34 = vrot.slane %v2167_v24, 5  ;;  %v2191_v37 = vshll.u32 %v3135_v60, 16  ;;  %v2197_v21 = vshll.u32 %v4503_v9, 16 }
  0x7c   : > { %3460 = vmatprep.subr.bf16.mxu0 %v4442_v16  ;;  %v2146_v24 = vor.u32 %v2145_v46, %v2142_v58  ;;  %v2201_v58 = vshrl.u32 %v4503_v9, 16  ;;  %v2212_v46 = vshrl.u32 %v3138_v33, 16 }
  0x7d   : > { %v2179_v0 = vrot.slane %v2177_v15, 4  ;;  %v2156_v15 = vor.u32 %v2155_v51, %v4486_v10  ;;  %v2215_v51 = vshll.u32 %v3138_v33, 16 }
  0x7e   : > { %3429 = vmatmul.mubr.msk.bf16.gmra.mrb[4].mxu0 %vm452_vm3, %v3710_v47  ;;  %v4489_v47 = vld [vmem:[%s3948_s8 + $0x38] sm:$0x1]  ;;  %v2147_v60 = vrot.slane %v2146_v24, 4  ;;  %v2193_v24 = vrot.slane %v2191_v37, 5  ;;  %v2203_v43 = vrot.slane %v2201_v58, 4  ;;  %v2214_v52 = vrot.slane %v2212_v46, 4 }
  0x7f   : > { %3432 = vmatprep.mubr.msk.bf16.mxu0 %vm452_vm3, %v3712_v17  ;;  %v4497_v17 = vrot.slane %v2173_v3, 5  ;;  %v4514_v3 = vld [vmem:[%s3948_s8 + $0x4c] sm:$0xf]  ;;  %v2157_v33 = vrot.slane %v2156_v15, 4  ;;  %v2217_v27 = vrot.slane %v2215_v51, 5  ;;  %v1374_v37 = vshll.u32 %v4252_v45, 16 }
  0x80   : > { %3337 = vmatmul.mubr.msk.bf16.gmra.mrb[12].mxu1 %vm452_vm3, %v2941_v44  ;;  %v4494_v44 = vsel %vm4138_vm6, %v827_v50, %v828_v38  ;;  %v2170_v38 = vor.u32 %v2169_v34, %v2166_v29  ;;  %v2183_v50 = vshll.u32 %v4489_v47, 16  ;;  %v2221_v29 = vshll.u32 %v4514_v3, 16  ;;  %v4550_v15 = vld [vmem:[%s3948_s8 + $0x50] sm:$0x1] }
  0x81   : > { %3344 = vmatprep.mubr.msk.bf16.mxu1 %vm452_vm3, %v2960_v49  ;;  %v3715_v49 = vld [vmem:[%s3948_s8 + $0x60] sm:$0xff]   ;;  %v2180_v39 = vor.u32 %v2179_v0, %v4497_v17  ;;  %v3150_v34 = vcombine.low %v2128_v61, %v2138_v32  ;;  %v2161_v0 = vrot.slane %v2159_v36, 5  ;;  %v2225_v19 = vshrl.u32 %v4514_v3, 16  ;;  %v3716_v61 = vld [vmem:[%s3948_s8 + $0x6c] sm:$0xff]  }
  0x82   : > { %v2171_v26 = vrot.slane %v2170_v38, 4  ;;  %v2185_v56 = vrot.slane %v2183_v50, 5  ;;  %v4542_v36 = vrot.slane %v2197_v21, 5  ;;  %v4547_v42 = vrot.slane %v2221_v29, 5 }
  0x83   : > { %v2181_v32 = vrot.slane %v2180_v39, 4  ;;  %v2152_v21 = vsel %vm3981_vm2, %v2147_v60, %v4486_v10  ;;  %v2162_v58 = vsel %vm3981_vm2, %v2157_v33, %v2161_v0  ;;  %v3144_v10 = vld [vmem:[%s3948_s8 + $0x60] sm:$0xf]  ;;  %v4573_v60 = vld [vmem:[%s3948_s8 + $0x64] sm:$0xf]  ;;  %v2218_v0 = vor.u32 %v2217_v27, %v2214_v52 }
  0x84   : > { %v2176_v46 = vsel %vm3981_vm2, %v2171_v26, %v4497_v17  ;;  %v2204_v51 = vor.u32 %v2203_v43, %v4542_v36  ;;  %4920 = vst [vmem:[#allocation8_spill] sm:$0xff] %v4573_v60  ;;  %v2231_v43 = vshll.u32 %v4550_v15, 16  ;;  %v4592_v52 = vld [vmem:[%s3948_s8 + $0x5c] sm:$0x1]  ;;  %v2263_v1 = vshll.u32 %v3144_v10, 16 }
  0x85   : > { %v2186_v17 = vsel %vm3981_vm2, %v2181_v32, %v2185_v56  ;;  %v4921_v56 = vcombine.low %v4372_v25, %v4387_v48  ;;  %v2260_v32 = vshrl.u32 %v3144_v10, 16  ;;  %v2269_v53 = vshll.u32 %v4573_v60, 16 }
  0x86   : > { %3433 = vmatmul.mubr.msk.bf16.gmra.mrb[8].mxu0 %vm452_vm3, %v3714_v14  ;;  %v3141_v14 = vld [vmem:[%s3948_s8 + $0x54] sm:$0xf]  ;;  %v2205_v27 = vrot.slane %v2204_v51, 4  ;;  %v2219_v25 = vrot.slane %v2218_v0, 4  ;;  %v2233_v48 = vrot.slane %v2231_v43, 5  ;;  %v2255_v10 = vshll.u32 %v4592_v52, 16 }
  0x87   : > { %3436 = vmatprep.mubr.msk.bf16.mxu0 %vm452_vm3, %v3715_v49  ;;  %v4539_v49 = vld [vmem:[%s3948_s8 + $0x58] sm:$0xf]  ;;  %v2239_v38 = vshll.u32 %v3141_v14, 16  ;;  %v2262_v28 = vrot.slane %v2260_v32, 4  ;;  %v4605_v51 = vrot.slane %v1374_v37, 5  ;;  %v2284_v0 = vshrl.u32 %v3147_v57, 16 }
  0x88   : > { %3345 = vmatmul.mubr.msk.bf16.vlgmr.msra.gmra.mrb[0].mxu1 %vm452_vm3, %v2961_v4  ;;  %v2190_v4 = vrot.slane %v2188_v6, 4  ;;  %v2227_v6 = vrot.slane %v2225_v19, 4  ;;  %v2245_v50 = vshll.u32 %v4539_v49, 16  ;;  %v2249_v39 = vshrl.u32 %v4539_v49, 16 }
  0x89   : > { %3361 = vmatpush3.bf16.msra.mxu1 %v4340_v22  ;;  %3348 = vmatprep.mubr.msk.bf16.mxu1 %vm452_vm3, %v2962_v23  ;;  %v4545_v22 = vld [vmem:[%s3948_s8 + $0x44] sm:$0x1]  ;;  %v2236_v23 = vshrl.u32 %v3141_v14, 16  ;;  %v2241_v26 = vrot.slane %v2239_v38, 5  ;;  %v3152_v38 = vcombine.low %v2176_v46, %v2186_v17  ;;  %v4616_v17 = vld [vmem:[%s3948_s8 + $0x68] sm:$0x1]  ;;  %v4923_v32 = vcombine.low %v4449_v5, %v4460_v8 }
  0x8a   : > { %3362 = vmatprep.subr.bf16.mxu1 %v3717_v11  ;;  %v2194_v19 = vor.u32 %v2193_v24, %v2190_v4  ;;  %v2207_v29 = vshll.u32 %v4545_v22, 16  ;;  %v2228_v33 = vor.u32 %v2227_v6, %v4547_v42  ;;  %v4585_v4 = vrot.slane %v2245_v50, 5 }
  0x8b   : > { %v2238_v14 = vrot.slane %v2236_v23, 4  ;;  %v3151_v6 = vcombine.low %v2152_v21, %v2162_v58  ;;  %v2287_v43 = vshll.u32 %v3147_v57, 16  ;;  %v2293_v37 = vshll.u32 %v4601_v2, 16 }
  0x8c   : > { %v2195_v24 = vrot.slane %v2194_v19, 4  ;;  %v2209_v23 = vrot.slane %v2207_v29, 5  ;;  %v2229_v50 = vrot.slane %v2228_v33, 4  ;;  %v3720_v29 = vld [vmem:[%s4903_s1 + $0x88] sm:$0xff]   ;;  %v2224_v33 = vsel %vm3981_vm2, %v2219_v25, %v4547_v42 }
  0x8d   : > { %3363 = vmatpush3.bf16.msra.mxu1 %v3717_v11  ;;  %v4568_v11 = vld [vmem:[%s4903_s1 + $0x40] sm:$0xff]   ;;  %v2257_v57 = vrot.slane %v2255_v10, 5  ;;  %v2279_v42 = vshll.u32 %v4616_v17, 16  ;;  %v2289_v5 = vrot.slane %v2287_v43, 5  ;;  %v4640_v8 = vrot.slane %v2293_v37, 5 }
  0x8e   : > { %3480 = vmatprep.subr.bf16.mxu1 %v4568_v11  ;;  %3437 = vmatmul.mubr.msk.bf16.gmra.mrb[12].mxu0 %vm452_vm3, %v3716_v61  ;;  %v2251_v61 = vrot.slane %v2249_v39, 4  ;;  %v2242_v39 = vor.u32 %v2241_v26, %v2238_v14  ;;  %v2200_v58 = vsel %vm3981_vm2, %v2195_v24, %v4542_v36  ;;  %v2210_v46 = vsel %vm3981_vm2, %v2205_v27, %v2209_v23  ;;  %v3719_v23 = vld [vmem:[%s3948_s8 + $0xc] sm:$0xff]  }
  0x8f   : > { %3444 = vmatprep.mubr.msk.bf16.mxu0 %vm452_vm3, %v3150_v34  ;;  %v1378_v34 = vshrl.u32 %v4252_v45, 16  ;;  %v4603_v45 = vrot.slane %v2269_v53, 5  ;;  %v2297_v14 = vshrl.u32 %v4601_v2, 16  ;;  %v4922_v36 = vcombine.low %v4406_v20, %v4425_v35 }
  0x90   : > { %3349 = vmatmul.mubr.msk.bf16.gmra.mrb[4].mxu1 %vm452_vm3, %v2963_v7  ;;  %v2273_v7 = vshrl.u32 %v4573_v60, 16  ;;  %v2265_v60 = vrot.slane %v2263_v1, 5  ;;  %v2234_v26 = vsel %vm3981_vm2, %v2229_v50, %v2233_v48  ;;  %v1384_v53 = vshll.u32 %v4258_v41, 16 }
  0x91   : > { %3352 = vmatprep.mubr.msk.bf16.mxu1 %vm452_vm3, %v4921_v56  ;;  %v2252_v56 = vor.u32 %v2251_v61, %v4585_v4  ;;  %v1380_v21 = vrot.slane %v1378_v34, 4  ;;  %v2243_v61 = vrot.slane %v2242_v39, 4  ;;  %v2286_v34 = vrot.slane %v2284_v0, 4 }
  0x92   : > { %v2275_v19 = vrot.slane %v2273_v7, 4  ;;  %v2266_v35 = vor.u32 %v2265_v60, %v2262_v28  ;;  %v3153_v7 = vcombine.low %v2200_v58, %v2210_v46  ;;  %v2299_v24 = vrot.slane %v2297_v14, 4  ;;  %v4646_v60 = vld [vmem:[%s3948_s8 + $0x74] sm:$0x1] }
  0x93   : > { %v2253_v20 = vrot.slane %v2252_v56, 4  ;;  %v1381_v1 = vor.u32 %v1380_v21, %v4605_v51  ;;  %v3154_v27 = vcombine.low %v2224_v33, %v2234_v26  ;;  %v2248_v28 = vsel %vm3981_vm2, %v2243_v61, %v4585_v4  ;;  %v3029_v56 = vld [vmem:[%s3948_s8 + $0x48] sm:$0xf]  ;;  %v3168_v21 = vld [vmem:[%s3948_s8 + $0x18] sm:$0xe] }
  0x94   : > { %v2281_v25 = vrot.slane %v2279_v42, 5  ;;  %v1386_v50 = vrot.slane %v1384_v53, 5  ;;  %v2518_v39 = vrot.slane %v4394_v54, 5  ;;  %v2290_v10 = vor.u32 %v2289_v5, %v2286_v34  ;;  %v3170_v5 = vld [vmem:[%s3948_s8 + $0x30] sm:$0xe] }
  0x95   : > { %v2258_v41 = vsel %vm3981_vm2, %v2253_v20, %v2257_v57  ;;  %v1382_v48 = vrot.slane %v1381_v1, 4  ;;  %v2300_v4 = vor.u32 %v2299_v24, %v4640_v8  ;;  %v4924_v58 = vcombine.low %v4482_v18, %v4494_v44 }
  0x96   : > { %3445 = vmatmul.mubr.msk.bf16.vlgmr.msra.gmra.mrb[0].mxu0 %vm452_vm3, %v3151_v6  ;;  %v2267_v6 = vrot.slane %v2266_v35, 4  ;;  %v3155_v46 = vcombine.low %v2248_v28, %v2258_v41  ;;  %v1365_v0 = vshrl.u32 %v3029_v56, 16  ;;  %v1368_v43 = vshll.u32 %v3029_v56, 16  ;;  %v3722_v35 = vld [vmem:[%s3948_s8 + $0x24] sm:$0xff]   ;;  %v3723_v56 = vld [vmem:[%s3948_s8 + $0x30] sm:$0xff]  }
  0x97   : > { %3461 = vmatpush3.bf16.msra.mxu0 %v4442_v16  ;;  %3448 = vmatprep.mubr.msk.bf16.mxu0 %vm452_vm3, %v3152_v38  ;;  %v2276_v16 = vor.u32 %v2275_v19, %v4603_v45  ;;  %v2303_v19 = vshll.u32 %v4646_v60, 16  ;;  %v3176_v18 = vrot.slane %v3168_v21, 9  ;;  %v2520_v44 = vrot.slane %v2518_v39, 4 }
  0x98   : > { %3353 = vmatmul.mubr.msk.bf16.gmra.mrb[8].mxu1 %vm452_vm3, %v4922_v36  ;;  %3462 = vmatprep.subr.bf16.mxu0 %v3720_v29  ;;  %v2272_v54 = vsel %vm3981_vm2, %v2267_v6, %v4603_v45  ;;  %v2521_v37 = vrot.slane %v4421_v31, 5  ;;  %v1387_v14 = vsel %vm3981_vm2, %v1382_v48, %v1386_v50  ;;  %v2291_v36 = vrot.slane %v2290_v10, 4  ;;  %v3721_v45 = vld [vmem:[%s3948_s8 + $0x18] sm:$0xff]   ;;  %v3169_v31 = vld [vmem:[%s3948_s8 + $0x24] sm:$0xe] }
  0x99   : > { %3356 = vmatprep.mubr.msk.bf16.mxu1 %vm452_vm3, %v4923_v32  ;;  %v2277_v38 = vrot.slane %v2276_v16, 4  ;;  %v2301_v33 = vrot.slane %v2300_v4, 4  ;;  %v2305_v26 = vrot.slane %v2303_v19, 5  ;;  %v1367_v61 = vrot.slane %v1365_v0, 4  ;;  %v3026_v32 = vld [vmem:[%s3948_s8 + $0x3c] sm:$0xf] }
  0x9a   : > { %v1370_v20 = vrot.slane %v1368_v43, 5  ;;  %v2519_v16 = vsel %vm4138_vm6, %v3176_v18, %v2518_v39  ;;  %v2522_v42 = vsel %vm4138_vm6, %v2520_v44, %v2521_v37  ;;  %v2525_v1 = vrot.slane %v4445_v63, 5  ;;  %v3032_v43 = vld [vmem:[%s3948_s8 + $0x54] sm:$0xf] }
  0x9b   : > { %3463 = vmatpush3.bf16.msra.mxu0 %v3720_v29  ;;  %v2282_v29 = vsel %vm3981_vm2, %v2277_v38, %v2281_v25  ;;  %v2306_v34 = vsel %vm3981_vm2, %v2301_v33, %v2305_v26  ;;  %v2532_v24 = vrot.slane %v4463_v40, 5  ;;  %v1344_v28 = vshll.u32 %v3026_v32, 16  ;;  %v3729_v40 = vld [vmem:[%s4903_s1 + $0x48] sm:$0xff]  }
  0x9c   : > { %v3156_v57 = vcombine.low %v2272_v54, %v2282_v29  ;;  %v1371_v53 = vor.u32 %v1370_v20, %v1367_v61  ;;  %v1350_v63 = vshll.u32 %v4235_v12, 16  ;;  %v2528_v6 = vrot.slane %v4478_v59, 5  ;;  %v3171_v54 = vld [vmem:[%s3948_s8 + $0x3c] sm:$0xe] }
  0x9d   : > { %v3184_v38 = vcombine.low %v2519_v16, %v2522_v42  ;;  %v2527_v25 = vrot.slane %v2525_v1, 4  ;;  %v3178_v48 = vrot.slane %v3170_v5, 9  ;;  %v2534_v50 = vrot.slane %v2532_v24, 4  ;;  %v3725_v42 = vld [vmem:[%s3948_s8 + $0x48] sm:$0xff]  }
  0x9e   : > { %3449 = vmatmul.mubr.msk.bf16.gmra.mrb[4].mxu0 %vm452_vm3, %v3153_v7  ;;  %v2296_v7 = vsel %vm3981_vm2, %v2291_v36, %v4640_v8  ;;  %v1372_v41 = vrot.slane %v1371_v53, 4  ;;  %v3177_v8 = vrot.slane %v3169_v31, 9  ;;  %v2535_v39 = vrot.slane %v4489_v47, 5 }
  0x9f   : > { %3452 = vmatprep.mubr.msk.bf16.mxu0 %vm452_vm3, %v3154_v27  ;;  %v1341_v27 = vshrl.u32 %v3026_v32, 16  ;;  %v1346_v4 = vrot.slane %v1344_v28, 5  ;;  %v4705_v19 = vrot.slane %v1350_v63, 5  ;;  %v2533_v47 = vsel %vm4138_vm6, %v3178_v48, %v2532_v24 }
  0xa0   : > { %3357 = vmatmul.mubr.msk.bf16.gmra.mrb[12].mxu1 %vm452_vm3, %v4924_v58  ;;  %v3724_v58 = vld [vmem:[%s3948_s8 + $0x3c] sm:$0xff]   ;;  %v2539_v29 = vrot.slane %v4503_v9, 5  ;;  %v1360_v0 = vshll.u32 %v4238_v13, 16  ;;  %v2536_v18 = vsel %vm4138_vm6, %v2534_v50, %v2535_v39  ;;  %v2546_v36 = vrot.slane %v4514_v3, 5 }
  0xa1   : > { %3364 = vmatprep.mubr.msk.bf16.mxu1 %vm452_vm3, %v3719_v23  ;;  %v1354_v23 = vshrl.u32 %v4235_v12, 16  ;;  %v1377_v12 = vsel %vm3981_vm2, %v1372_v41, %v4605_v51  ;;  %v1343_v10 = vrot.slane %v1341_v27, 4  ;;  %v2529_v51 = vsel %vm4138_vm6, %v2527_v25, %v2528_v6  ;;  %v3035_v27 = vld [vmem:[%s3948_s8 + $0x60] sm:$0xf]  ;;  %v3173_v6 = vld [vmem:[%s3948_s8 + $0x54] sm:$0xe] }
  0xa2   : > { %v4702_v59 = vcombine.low %v1377_v12, %v1387_v14  ;;  %v3172_v14 = vld [vmem:[%s3948_s8 + $0x48] sm:$0xe]  ;;  %v3179_v13 = vrot.slane %v3171_v54, 9  ;;  %v2542_v33 = vrot.slane %v4545_v22, 5  ;;  %v1389_v26 = vshrl.u32 %v3032_v43, 16  ;;  %v4926_v12 = vld [vmem:[#allocation6_spill] sm:$0xff] }
  0xa3   : > { %v1356_v21 = vrot.slane %v1354_v23, 4  ;;  %v1347_v44 = vor.u32 %v1346_v4, %v1343_v10  ;;  %v1392_v61 = vshll.u32 %v3032_v43, 16  ;;  %v3186_v32 = vcombine.low %v2533_v47, %v2536_v18  ;;  %v4927_v4 = vld [vmem:[#allocation5_spill] sm:$0xff]  ;;  %v3727_v54 = vld [vmem:[%s3948_s8 + $0x60] sm:$0xff]  }
  0xa4   : > { %v2541_v20 = vrot.slane %v2539_v29, 4  ;;  %v3180_v16 = vrot.slane %v3172_v14, 9  ;;  %v2549_v53 = vrot.slane %v4550_v15, 5  ;;  %v1391_v22 = vrot.slane %v1389_v26, 4 }
  0xa5   : > { %v1357_v37 = vor.u32 %v1356_v21, %v4705_v19  ;;  %v1348_v3 = vrot.slane %v1347_v44, 4  ;;  %v2553_v15 = vrot.slane %v4539_v49, 5  ;;  %v3174_v49 = vld [vmem:[%s3948_s8 + $0x60] sm:$0xe]  ;;  %v1413_v25 = vshrl.u32 %v3035_v27, 16 }
  0xa6   : > { %3453 = vmatmul.mubr.msk.bf16.gmra.mrb[8].mxu0 %vm452_vm3, %v3155_v46  ;;  %v2526_v46 = vsel %vm4138_vm6, %v3177_v8, %v2525_v1  ;;  %v2548_v1 = vrot.slane %v2546_v36, 4  ;;  %v2543_v28 = vsel %vm4138_vm6, %v2541_v20, %v2542_v33  ;;  %v2547_v63 = vsel %vm4138_vm6, %v3180_v16, %v2546_v36 }
  0xa7   : > { %3456 = vmatprep.mubr.msk.bf16.mxu0 %vm452_vm3, %v3156_v57  ;;  %v3185_v9 = vcombine.low %v2526_v46, %v2529_v51  ;;  %v1402_v57 = vshrl.u32 %v4272_v62, 16  ;;  %v1358_v31 = vrot.slane %v1357_v37, 4  ;;  %v1353_v23 = vsel %vm3981_vm2, %v1348_v3, %v4705_v19 }
  0xa8   : > { %3365 = vmatmul.mubr.msk.bf16.vlgmr.msra.gmra.mrb[0].mxu1 %vm452_vm3, %v3721_v45  ;;  %v1398_v45 = vshll.u32 %v4272_v62, 16  ;;  %v2540_v62 = vsel %vm4138_vm6, %v3179_v13, %v2539_v29  ;;  %v2550_v8 = vsel %vm4138_vm6, %v2548_v1, %v2549_v53  ;;  %v1416_v48 = vshll.u32 %v3035_v27, 16 }
  0xa9   : > { %3482 = vmatpush3.bf16.msra.mxu1 %v4568_v11  ;;  %3368 = vmatprep.mubr.msk.bf16.mxu1 %vm452_vm3, %v3722_v35  ;;  %v3157_v11 = vcombine.low %v2296_v7, %v2306_v34  ;;  %v1362_v35 = vrot.slane %v1360_v0, 5  ;;  %v3726_v7 = vld [vmem:[%s3948_s8 + $0x54] sm:$0xff]   ;;  %v1394_v34 = vrot.slane %v1392_v61, 5  ;;  %v1404_v24 = vrot.slane %v1402_v57, 4 }
  0xaa   : > { %3481 = vmatprep.subr.bf16.mxu1 %v3729_v40  ;;  %v1400_v5 = vrot.slane %v1398_v45, 5  ;;  %v1426_v50 = vshrl.u32 %v4926_v12, 16  ;;  %v3187_v39 = vcombine.low %v2540_v62, %v2543_v28  ;;  %v1408_v19 = vshll.u32 %v4927_v4, 16 }
  0xab   : > { %v1363_v41 = vsel %vm3981_vm2, %v1358_v31, %v1362_v35  ;;  %v3188_v21 = vcombine.low %v2547_v63, %v2550_v8  ;;  %v2555_v46 = vrot.slane %v2553_v15, 4  ;;  %v2556_v51 = vrot.slane %v4592_v52, 5  ;;  %v3175_v35 = vld [vmem:[%s3948_s8 + $0x6c] sm:$0xe]  ;;  %s175_s8 = sand.u32 1, %s3800_s13  }
  0xac   : > { %v1405_v10 = vor.u32 %v1404_v24, %v1400_v5  ;;  %v3042_v47 = vcombine.low %v1353_v23, %v1363_v41  ;;  %v3182_v29 = vrot.slane %v3174_v49, 9  ;;  %v2563_v43 = vrot.slane %v4616_v17, 5  ;;  %s2911_s21 = sshll.u32 %s175_s8, 7  ;;  %s4850_s7 = scalar_lea.sflag [#allocation3], %s175_s8 }
  0xad   : > { %3483 = vmatpush3.bf16.msra.mxu1 %v3729_v40  ;;  %v4925_v40 = vld [vmem:[#allocation8_spill] sm:$0xff]  ;;  %v1415_v18 = vrot.slane %v1413_v25, 4  ;;  %v1418_v44 = vrot.slane %v1416_v48, 5  ;;  %v1428_v14 = vrot.slane %v1426_v50, 4  ;;  %v1410_v13 = vrot.slane %v1408_v19, 5  ;;  %s4808_s24 = scalar_lea.vmem [#allocation2], %s2911_s21 }
  0xae   : > { %3457 = vmatmul.mubr.msk.bf16.gmra.mrb[12].mxu0 %vm452_vm3, %v3157_v11  ;;  %v1422_v11 = vshll.u32 %v4926_v12, 16  ;;  %v2557_v17 = vsel %vm4138_vm6, %v2555_v46, %v2556_v51  ;;  %v2567_v26 = vrot.slane %v4601_v2, 5  ;;  %v3183_v1 = vrot.slane %v3175_v35, 9  ;;  %s2820_s16 = sshll.u32 %s4808_s24, 4  ;;  %s4843_s16 = int_to_ptr.vmem [resolvable:$true] %s2820_s16 }
  0xaf   : > { %3464 = vmatprep.mubr.msk.bf16.mxu0 %vm452_vm3, %v3184_v38  ;;  %v2560_v38 = vrot.slane %v4925_v40, 5  ;;  %v1419_v45 = vor.u32 %v1418_v44, %v1415_v18  ;;  %v2570_v53 = vrot.slane %v4646_v60, 5  ;;  %s3730_s9 = scalar_lea.vmem %s4843_s16, 2048  ;;  %p3737_p2 = scmp.lt.s32.totalorder %s4843_s16, %s3735_s11 }
  0xb0   : > { %3369 = vmatmul.mubr.msk.bf16.gmra.mrb[4].mxu1 %vm452_vm3, %v3723_v56  ;;  %v1395_v56 = vor.u32 %v1394_v34, %v1391_v22  ;;  %v1424_v37 = vrot.slane %v1422_v11, 5  ;;  %v2569_v2 = vrot.slane %v2567_v26, 4  ;;  %p3731_p13 = scmp.ne.s32.totalorder %s4843_s16, %s3730_s9  ;;  %p3738_p4 = scmp.lt.s32.totalorder %s3736_s20, %s3730_s9 }
  0xb1   : > { %3372 = vmatprep.mubr.msk.bf16.mxu1 %vm452_vm3, %v3724_v58  ;;  %v3181_v58 = vrot.slane %v3173_v6, 9  ;;  %v2562_v0 = vrot.slane %v2560_v38, 4  ;;  %v2561_v33 = vsel %vm4138_vm6, %v3182_v29, %v2560_v38  ;;  %v1420_v22 = vrot.slane %v1419_v45, 4 }
  0xb2   : > { %v1396_v36 = vrot.slane %v1395_v56, 4  ;;  %v1429_v57 = vor.u32 %v1428_v14, %v1424_v37  ;;  %v2571_v27 = vsel %vm4138_vm6, %v2569_v2, %v2570_v53  ;;  %p3732_p0 = pnand %p3731_p13, %p3900_p3  ;;  %p3739_p5 = por %p3738_p4, %p3737_p2 }
  0xb3   : > { %v2554_v52 = vsel %vm4138_vm6, %v3181_v58, %v2553_v15  ;;  %v2564_v61 = vsel %vm4138_vm6, %v2562_v0, %v2563_v43  ;;  %v1425_v60 = vsel %vm3981_vm2, %v1420_v22, %v1424_v37 }
  0xb4   : > { %v1401_v16 = vsel %vm3981_vm2, %v1396_v36, %v1400_v5  ;;  %v3189_v3 = vcombine.low %v2554_v52, %v2557_v17  ;;  %v3190_v31 = vcombine.low %v2561_v33, %v2564_v61  ;;  %v1430_v34 = vrot.slane %v1429_v57, 4  ;;  %p3733_p1 = pneg %p3732_p0 }
  0xb5   : > { %v2568_v5 = vsel %vm4138_vm6, %v3183_v1, %v2567_v26 }
  0xb6   : > { %3465 = vmatmul.mubr.msk.bf16.vlgmr.msra.gmra.mrb[0].mxu0 %vm452_vm3, %v3185_v9  ;;  %v1406_v9 = vrot.slane %v1405_v10, 4  ;;  %v3191_v28 = vcombine.low %v2568_v5, %v2571_v27  ;;  %p3740_p6 = pnand %p3739_p5, %p3733_p1 }
  0xb7   : > { %3468 = vmatprep.mubr.msk.bf16.mxu0 %vm452_vm3, %v3186_v32  ;;  %v4928_v32 = vld [vmem:[#allocation7_spill] sm:$0xff] }
  0xb8   : > { %3373 = vmatmul.mubr.msk.bf16.gmra.mrb[8].mxu1 %vm452_vm3, %v3725_v42  ;;  %v1432_v20 = vshll.u32 %v4928_v32, 16  ;;  %v1411_v42 = vsel %vm3981_vm2, %v1406_v9, %v1410_v13 }
  0xb9   : > { %3376 = vmatprep.mubr.msk.bf16.mxu1 %vm452_vm3, %v3726_v7  ;;  %v3044_v7 = vcombine.low %v1401_v16, %v1411_v42 }
  0xba   : > { %v1434_v24 = vrot.slane %v1432_v20, 5 }
  0xbc   : > { %v1435_v62 = vsel %vm3981_vm2, %v1430_v34, %v1434_v24 }
  0xbe   : > { %3469 = vmatmul.mubr.msk.bf16.gmra.mrb[4].mxu0 %vm452_vm3, %v3187_v39 }
  0xbf   : > { %3472 = vmatprep.mubr.msk.bf16.mxu0 %vm452_vm3, %v3188_v21 }
  0xc0   : > { %3377 = vmatmul.mubr.msk.bf16.gmra.mrb[12].mxu1 %vm452_vm3, %v3727_v54 }
  0xc1   : > { %3392 = vmatprep.mubr.msk.bf16.mxu1 %vm452_vm3, %v3042_v47 }
  0xc6   : > { %3473 = vmatmul.mubr.msk.bf16.gmra.mrb[8].mxu0 %vm452_vm3, %v3189_v3 }
  0xc7   : > { %3476 = vmatprep.mubr.msk.bf16.mxu0 %vm452_vm3, %v3190_v31 }
  0xc8   : > { %3393 = vmatmul.mubr.msk.bf16.vlgmr.msra.gmra.mrb[8].mxu1 %vm452_vm3, %v4702_v59  ;;  %v3045_v59 = vcombine.low %v1425_v60, %v1435_v62 }
  0xc9   : > { %3396 = vmatprep.mubr.msk.bf16.mxu1 %vm452_vm3, %v3044_v7 }
  0xce   : > { %3477 = vmatmul.mubr.msk.bf16.gmra.mrb[12].mxu0 %vm452_vm3, %v3191_v28 }
  0xd0   : > { %3397 = vmatmul.mubr.msk.bf16.gmra.mrb[12].mxu1 %vm452_vm3, %v3045_v59 }
 0x17b   : > { %v3366_v63 = vpop.f32.mrb[0].mxu1 }
 0x17c   : > { %v1141_v15 = vpop.f32.mrb[1].mxu1 }
 0x17d   : > { %v3367_v55 = vpop.f32.mrb[2].mxu1 }
 0x17e   : > { %v1144_v23 = vpop.f32.mrb[3].mxu1 }
 0x183   : > { %v3370_v41 = vpop.f32.mrb[4].mxu1 }
 0x184   : > { %v1157_v8 = vpop.f32.mrb[5].mxu1 }
 0x185   : > { %v3371_v6 = vpop.f32.mrb[6].mxu1 }
 0x186   : > { %v1160_v40 = vpop.f32.mrb[7].mxu1 }
 0x189   : > { %v3466_v38 = vpop.f32.mrb[0].mxu0 }
 0x18a   : > { %v3484_v49 = vadd.f32 %v3466_v38, %v3366_v63  ;;  %v2670_v25 = vpop.f32.mrb[1].mxu0 }
 0x18b   : > { %v3485_v48 = vadd.f32 %v2670_v25, %v1141_v15  ;;  %v3467_v12 = vpop.f32.mrb[2].mxu0 }
 0x18c   : > { %v2758_v11 = vadd.f32 %v3484_v49, %v4800_v30  ;;  %v3486_v50 = vadd.f32 %v3467_v12, %v3367_v55  ;;  %v2673_v39 = vpop.f32.mrb[3].mxu0 }
 0x18d   : > { %v2756_v56 = vadd.f32 %v3485_v48, %v4800_v30  ;;  %v3487_v10 = vadd.f32 %v2673_v39, %v1144_v23 }
 0x18e   : > { %v2774_v4 = vmax.f32 %v2758_v11, 0.0  ;;  %v2759_v19 = vadd.f32 %v3486_v50, %v4800_v30 }
 0x18f   : > { %v2772_v21 = vmax.f32 %v2756_v56, 0.0  ;;  %v2757_v58 = vadd.f32 %v3487_v10, %v4800_v30 }
 0x190   : > { %2790 = vst [vmem:[%s4808_s24 + $0x10] sm:$0xff] %v2774_v4  ;;  %v2775_v46 = vmax.f32 %v2759_v19, 0.0 }
 0x191   : > { %2788 = vst [vmem:[%s4808_s24] sm:$0xff] %v2772_v21  ;;  %v2773_v51 = vmax.f32 %v2757_v58, 0.0  ;;  %v3470_v54 = vpop.f32.mrb[4].mxu0 }
 0x192   : > { %2791 = vst [vmem:[%s4808_s24 + $0x18] sm:$0xff] %v2775_v46  ;;  %v3488_v47 = vadd.f32 %v3470_v54, %v3370_v41  ;;  %v2686_v29 = vpop.f32.mrb[5].mxu0 }
 0x193   : > { %2789 = vst [vmem:[%s4808_s24 + $0x8] sm:$0xff] %v2773_v51  ;;  %v3489_v0 = vadd.f32 %v2686_v29, %v1157_v8  ;;  %v3471_v43 = vpop.f32.mrb[6].mxu0 }
 0x194   : > { %v2762_v18 = vadd.f32 %v3488_v47, %v4800_v30  ;;  %v3490_v44 = vadd.f32 %v3471_v43, %v3371_v6  ;;  %v2689_v37 = vpop.f32.mrb[7].mxu0 }
 0x195   : > { %v2760_v14 = vadd.f32 %v3489_v0, %v4800_v30  ;;  %v3491_v36 = vadd.f32 %v2689_v37, %v1160_v40 }
 0x196   : > { %v2778_v9 = vmax.f32 %v2762_v18, 0.0  ;;  %v2763_v13 = vadd.f32 %v3490_v44, %v4800_v30 }
 0x197   : > { %v2776_v52 = vmax.f32 %v2760_v14, 0.0  ;;  %v2761_v17 = vadd.f32 %v3491_v36, %v4800_v30 }
 0x198   : > { %2794 = vst [vmem:[%s4808_s24 + $0x30] sm:$0xff] %v2778_v9  ;;  %v2779_v33 = vmax.f32 %v2763_v13, 0.0 }
 0x199   : > { %2792 = vst [vmem:[%s4808_s24 + $0x20] sm:$0xff] %v2776_v52  ;;  %v2777_v26 = vmax.f32 %v2761_v17, 0.0  ;;  %v3474_v61 = vpop.f32.mrb[8].mxu0 }
 0x19a   : > { %2795 = vst [vmem:[%s4808_s24 + $0x38] sm:$0xff] %v2779_v33  ;;  %v2702_v57 = vpop.f32.mrb[9].mxu0 }
 0x19b   : > { %v3394_v45 = vpop.f32.mrb[8].mxu1  ;;  %2793 = vst [vmem:[%s4808_s24 + $0x28] sm:$0xff] %v2777_v26  ;;  %v3475_v35 = vpop.f32.mrb[10].mxu0 }
 0x19c   : > { %v3492_v32 = vadd.f32 %v3474_v61, %v3394_v45  ;;  %v1566_v20 = vpop.f32.mrb[9].mxu1  ;;  %v2705_v3 = vpop.f32.mrb[11].mxu0 }
 0x19d   : > { %v3493_v16 = vadd.f32 %v2702_v57, %v1566_v20  ;;  %v3395_v42 = vpop.f32.mrb[10].mxu1 }
 0x19e   : > { %v2766_v31 = vadd.f32 %v3492_v32, %v4800_v30  ;;  %v3494_v1 = vadd.f32 %v3475_v35, %v3395_v42  ;;  %v1569_v2 = vpop.f32.mrb[11].mxu1 }
 0x19f   : > { %v2764_v53 = vadd.f32 %v3493_v16, %v4800_v30  ;;  %v3495_v7 = vadd.f32 %v2705_v3, %v1569_v2 }
 0x1a0   : > { %v2782_v22 = vmax.f32 %v2766_v31, 0.0  ;;  %v2767_v34 = vadd.f32 %v3494_v1, %v4800_v30 }
 0x1a1   : > { %v2780_v24 = vmax.f32 %v2764_v53, 0.0  ;;  %v2765_v5 = vadd.f32 %v3495_v7, %v4800_v30  ;;  %v3478_v60 = vpop.f32.mrb[12].mxu0 }
 0x1a2   : > { %2798 = vst [vmem:[%s4808_s24 + $0x50] sm:$0xff] %v2782_v22  ;;  %v2783_v27 = vmax.f32 %v2767_v34, 0.0  ;;  %v2718_v59 = vpop.f32.mrb[13].mxu0 }
 0x1a3   : > { %2796 = vst [vmem:[%s4808_s24 + $0x40] sm:$0xff] %v2780_v24  ;;  %v2781_v62 = vmax.f32 %v2765_v5, 0.0  ;;  %v3398_v28 = vpop.f32.mrb[12].mxu1  ;;  %v3479_v55 = vpop.f32.mrb[14].mxu0 }
 0x1a4   : > { %2799 = vst [vmem:[%s4808_s24 + $0x58] sm:$0xff] %v2783_v27  ;;  %v3496_v63 = vadd.f32 %v3478_v60, %v3398_v28  ;;  %v1582_v15 = vpop.f32.mrb[13].mxu1  ;;  %v2721_v8 = vpop.f32.mrb[15].mxu0 }
 0x1a5   : > { %2797 = vst [vmem:[%s4808_s24 + $0x48] sm:$0xff] %v2781_v62  ;;  %v3497_v23 = vadd.f32 %v2718_v59, %v1582_v15  ;;  %v3399_v41 = vpop.f32.mrb[14].mxu1 }
 0x1a6   : > { %v2770_v6 = vadd.f32 %v3496_v63, %v4800_v30  ;;  %v3498_v40 = vadd.f32 %v3479_v55, %v3399_v41  ;;  %v1585_v38 = vpop.f32.mrb[15].mxu1 }
 0x1a7   : > { %v2768_v49 = vadd.f32 %v3497_v23, %v4800_v30  ;;  %v3499_v25 = vadd.f32 %v2721_v8, %v1585_v38 }
 0x1a8   : > { %v2786_v48 = vmax.f32 %v2770_v6, 0.0  ;;  %v2771_v12 = vadd.f32 %v3498_v40, %v4800_v30 }
 0x1a9   : > { %v2784_v11 = vmax.f32 %v2768_v49, 0.0  ;;  %v2769_v50 = vadd.f32 %v3499_v25, %v4800_v30 }
 0x1aa   : > { %2802 = vst [vmem:[%s4808_s24 + $0x70] sm:$0xff] %v2786_v48  ;;  %v2787_v39 = vmax.f32 %v2771_v12, 0.0 }
 0x1ab   : > { %2800 = vst [vmem:[%s4808_s24 + $0x60] sm:$0xff] %v2784_v11  ;;  %v2785_v56 = vmax.f32 %v2769_v50, 0.0 }
 0x1ac   : > { %2803 = vst [vmem:[%s4808_s24 + $0x78] sm:$0xff] %v2787_v39 }
 0x1ad   : > { %2801 = vst [vmem:[%s4808_s24 + $0x68] sm:$0xff] %v2785_v56 }
 0x1ae   : > { %3743 = shalt.err (!%p3740_p6)
}
 0x1af   : > { %s3744_s8 = scalar_lea.hbm %s4841_s6, 2048  ;;  %s3748_s27 = scalar_lea.hbm %s4905_s3, 8192 }
 0x1b0   : > { %p3745_p7 = scmp.ne.s32.totalorder %s4841_s6, %s3744_s8  ;;  %p3749_p11 = scmp.lt.u32.totalorder %s4841_s6, %s4905_s3 }
 0x1b1   : > { %p3750_p12 = scmp.lt.u32.totalorder %s3748_s27, %s3744_s8  ;;  %p3752_p0 = scmp.lt.u32.totalorder %s3744_s8, %s4841_s6 }
 0x1b2   : > { %p3746_p9 = pnand %p3745_p7, %p3900_p3 }
 0x1b3   : > { %p3751_p13 = por %p3750_p12, %p3749_p11 }
 0x1b4   : > { %p3747_p10 = pneg %p3746_p9 }
 0x1b5   : > { %p3753_p1 = por %p3752_p0, %p3751_p13 }
 0x1b7   : > { %p3754_p2 = pnand %p3753_p1, %p3747_p10 }
 0x1b9   : > { %3757 = shalt.err (!%p3754_p2)
}
 0x1ba   : > { %s3827_s15 = smov 128   ;;  %s3828_s4 = smov 8  }
 0x1bb   : > { %3613 = dma.vmem_to_hbm [thread:$0]  (%p3900_p3), %s4843_s16, 2048, %s4841_s6, %s4850_s7, %s3827_s15, %s3827_s15, %s3828_s4  }
 0x1bc PF: > { %p3619_p4 = scmp.ge.s32.totalorder %s3824_s19, 2  ;;  %s2835_s5 = sand.u32 1, %s3796_s12  }
 0x1bd   : > { %s2836_s9 = scalar_lea.sflag [#allocation3], %s2835_s5 }
 0x1be   : > { %p3616_p5 = pnand %p3619_p4, %p3909_p8 }
 0x1c0   : > { %3791 = dma.done.wait (!%p3616_p5), %s2836_s9, 2048  }
 0x1c1   : > { %3793 = vsyncadd (!%p3616_p5), %s2836_s9, 4294965248  ;;  %s16_s19 = sadd.s32 1, %s3824_s19   ;;  %s4929_s12 = smov %s3800_s13 }
 0x1c2   : > { %p13_p6 = scmp.ge.s32.totalorder %s16_s19, 6   ;;  %s4930_s13 = smov %s3804_s14 }
 0x1c3   : > { %s4931_s14 = smov %s3918_s30  ;;  %s4932_s15 = smov %s3816_s17 }
 0x1c4   : > { %s4933_s16 = smov %s3820_s18  ;;  %s4934_s17 = smov %s4937_s22 }
 0x1c5   : > { %s4935_s18 = smov %s4941_s23  ;;  %15 = sbr.rel (!%p13_p6) target bundleno = 5 (0x5), region = 70 }
 0x1cc   :  { %2841 = vsyncpa [#allocation3], 1 }
 0x1cd   :  { %2843 = vsyncpa [#allocation3 + $0x1], 1 }

</bundles_post_ra>
